<compile_context>
chip_gen: v5e
topology: v5e:2x2
jax: 0.10.0
libtpu: 0.0.40
codegen_flags: <defaults>
</compile_context>

<pallas_src>
import functools

import jax
import jax.numpy as jnp
from jax.experimental import pallas as pl
from jax.experimental.pallas import tpu as pltpu


def _mlp_fused_kernel(x_ref, w1_ref, b1_ref, w2_ref, b2_ref, o_ref):
    # One straight-line step per batch tile: no reduction axis, no scratch,
    # no pl.when branches.  bf16 MXU operands, f32 bias/ReLU math.
    h = jnp.dot(x_ref[...], w1_ref[...], preferred_element_type=jnp.float32)
    h = jnp.maximum(h + b1_ref[...], 0.0)
    # TODO(synk): BatchNorm1d branch (batch_norm_mlp=True) not implemented;
    # the module default uses nn.Identity, which is what this kernel computes.
    y = jnp.dot(h.astype(w2_ref.dtype), w2_ref[...],
                preferred_element_type=jnp.float32)
    o_ref[...] = (y + b2_ref[...]).astype(o_ref.dtype)


def _mlp_reduction_kernel(x_ref, w1_ref, b1_ref, w2_ref, b2_ref, o_ref,
                          acc_ref):
    # Fallback for shapes whose weights do not fit in VMEM.  Note: with the
    # batch axis outermost the W1/W2 blocks change every k step, so the full
    # weight set is re-streamed from HBM once per batch tile.
    k = pl.program_id(1)

    @pl.when(k == 0)
    def _():
        acc_ref[...] = jnp.zeros_like(acc_ref)

    h = jnp.dot(x_ref[...], w1_ref[...], preferred_element_type=jnp.float32)
    h = jnp.maximum(h + b1_ref[...], 0.0)
    acc_ref[...] += jnp.dot(h.astype(w2_ref.dtype), w2_ref[...],
                            preferred_element_type=jnp.float32)

    @pl.when(k == pl.num_programs(1) - 1)
    def _():
        o_ref[...] = (acc_ref[...] + b2_ref[...]).astype(o_ref.dtype)


# Keep the fused path's VMEM footprint well under v7x's 64 MiB physical VMEM.
_FUSED_VMEM_BUDGET = 40 << 20


@functools.partial(jax.jit, static_argnames=("tm", "tk", "out_dtype"))
def mlp_forward(x, w1, b1, w2, b2, *, tm=256, tk=None, out_dtype=None):
    batch, dim = x.shape
    hidden = w1.shape[1]
    emb = w2.shape[1]
    if out_dtype is None:
        out_dtype = x.dtype
    out_bytes = jnp.dtype(out_dtype).itemsize

    # Batch tile: MXU-row sized (256) by default, sublane (8) aligned, and the
    # batch is padded up to a multiple of tm only when tm < batch.
    tm = max(8, min(tm, batch))
    if tm >= batch:
        tm = batch
        padded_batch = batch
    else:
        tm = (tm // 8) * 8
        padded_batch = pl.cdiv(batch, tm) * tm
    if padded_batch != batch:
        x = jnp.pad(x, ((0, padded_batch - batch), (0, 0)))

    # bf16 MXU operands (no-op casts when the caller already stores bf16);
    # biases stay f32 and are broadcast over rows inside the kernel.
    xb = x.astype(jnp.bfloat16)
    w1b = w1.astype(jnp.bfloat16)
    w2b = w2.astype(jnp.bfloat16)
    b1f = b1.astype(jnp.float32).reshape(1, hidden)
    b2f = b2.astype(jnp.float32).reshape(1, emb)

    # Fused-path VMEM footprint (double-buffered x/out, resident weights,
    # f32 intermediates h and y).
    fused_bytes = (
        2 * tm * dim * 2                      # x tiles (bf16, double buffered)
        + 2 * (dim * hidden + hidden * emb) * 2   # W1 + W2 (bf16)
        + (hidden + emb) * 4                  # biases (f32)
        + 2 * tm * emb * out_bytes            # output tiles
        + tm * hidden * 4 + tm * emb * 4      # h, y intermediates (f32)
    )

    if fused_bytes <= _FUSED_VMEM_BUDGET:
        # ---- Fused path: grid over batch tiles only; weights stay resident.
        grid = (padded_batch // tm,)
        vmem_limit = int(min(max(fused_bytes * 3 // 2, 32 << 20), 60 << 20))
        out = pl.pallas_call(
            _mlp_fused_kernel,
            out_shape=jax.ShapeDtypeStruct((padded_batch, emb), out_dtype),
            grid_spec=pltpu.PrefetchScalarGridSpec(
                num_scalar_prefetch=0,
                grid=grid,
                in_specs=[
                    pl.BlockSpec((tm, dim), lambda i: (i, 0)),
                    # Constant index_maps -> weights/biases DMA'd once,
                    # resident for all batch tiles.
                    pl.BlockSpec((dim, hidden), lambda i: (0, 0)),
                    pl.BlockSpec((1, hidden), lambda i: (0, 0)),
                    pl.BlockSpec((hidden, emb), lambda i: (0, 0)),
                    pl.BlockSpec((1, emb), lambda i: (0, 0)),
                ],
                out_specs=pl.BlockSpec((tm, emb), lambda i: (i, 0)),
            ),
            compiler_params=pltpu.CompilerParams(
                dimension_semantics=("parallel",),
                vmem_limit_bytes=vmem_limit,
            ),
        )(xb, w1b, b1f, w2b, b2f)
    else:
        # ---- Reduction fallback for very large hidden/emb.
        if tk is None:
            tk = hidden
            for cand in (1024, 512, 256, 128):
                if hidden % cand == 0:
                    tk = cand
                    break
        tk = min(tk, hidden)
        assert hidden % tk == 0, "hidden must be divisible by the hidden tile"
        red_bytes = (
            2 * tm * dim * 2
            + 2 * (dim * tk + tk * emb) * 2
            + (tk + emb) * 4
            + 2 * tm * emb * out_bytes
            + tm * emb * 4                    # f32 accumulator scratch
            + tm * tk * 4                     # h intermediate
        )
        vmem_limit = int(min(max(red_bytes * 3 // 2, 32 << 20), 60 << 20))
        grid = (padded_batch // tm, hidden // tk)
        out = pl.pallas_call(
            _mlp_reduction_kernel,
            out_shape=jax.ShapeDtypeStruct((padded_batch, emb), out_dtype),
            grid_spec=pltpu.PrefetchScalarGridSpec(
                num_scalar_prefetch=0,
                grid=grid,
                in_specs=[
                    pl.BlockSpec((tm, dim), lambda i, k: (i, 0)),
                    pl.BlockSpec((dim, tk), lambda i, k: (0, k)),
                    pl.BlockSpec((1, tk), lambda i, k: (0, k)),
                    pl.BlockSpec((tk, emb), lambda i, k: (k, 0)),
                    pl.BlockSpec((1, emb), lambda i, k: (0, 0)),
                ],
                out_specs=pl.BlockSpec((tm, emb), lambda i, k: (i, 0)),
                scratch_shapes=[pltpu.VMEM((tm, emb), jnp.float32)],
            ),
            compiler_params=pltpu.CompilerParams(
                dimension_semantics=("parallel", "arbitrary"),
                vmem_limit_bytes=vmem_limit,
            ),
        )(xb, w1b, b1f, w2b, b2f)

    if padded_batch != batch:
        out = out[:batch]
    return out


def init_linear_params(key, fan_in, fan_out, dtype=jnp.float32):
    # Mirrors torch.nn.Linear default init: U(-1/sqrt(fan_in), 1/sqrt(fan_in)).
    k_w, k_b = jax.random.split(key)
    bound = 1.0 / jnp.sqrt(jnp.float32(fan_in))
    # Stored as (in, out) so the kernel uses x @ W (== x @ W_torch.T).
    w = jax.random.uniform(k_w, (fan_in, fan_out), dtype, -bound, bound)
    b = jax.random.uniform(k_b, (fan_out,), dtype, -bound, bound)
    return w, b


if __name__ == "__main__":
    # Small MXU/lane-aligned shapes consistent with MLP(dim, embedding_size,
    # hidden_size).  batch=512 with tm=256 keeps >= 2 parallel batch tiles
    # (feeds both v7x TensorCores) while the fused path keeps weights resident.
    batch, dim, hidden_size, embedding_size = 512, 128, 512, 256

    key = jax.random.PRNGKey(0)
    k_x, k_l1, k_l2 = jax.random.split(key, 3)

    x = jax.random.normal(k_x, (batch, dim), jnp.float32)
    w1, b1 = init_linear_params(k_l1, dim, hidden_size)
    w2, b2 = init_linear_params(k_l2, hidden_size, embedding_size)

    # One-time persistent bf16 cast of the matmul operands (per perf review the
    # kernel wrapper should not pay a full HBM read+write cast on every call).
    xb16 = x.astype(jnp.bfloat16)
    w1b16 = w1.astype(jnp.bfloat16)
    w2b16 = w2.astype(jnp.bfloat16)

    out = mlp_forward(xb16, w1b16, b1, w2b16, b2, out_dtype=jnp.float32)
    jax.block_until_ready(out)
    assert out.shape == (batch, embedding_size)

    # Reference with the same bf16 operand rounding as the kernel (f32 math).
    xf = xb16.astype(jnp.float32)
    w1f = w1b16.astype(jnp.float32)
    w2f = w2b16.astype(jnp.float32)
    h_ref = jnp.maximum(xf @ w1f + b1, 0.0)
    ref = h_ref.astype(jnp.bfloat16).astype(jnp.float32) @ w2f + b2
    assert jnp.allclose(out, ref, atol=5e-3, rtol=5e-3), (
        float(jnp.max(jnp.abs(out - ref))))

    # Loose sanity check against the pure-f32 PyTorch-equivalent forward.
    ref_f32 = jnp.maximum(x @ w1 + b1, 0.0) @ w2 + b2
    assert jnp.allclose(out, ref_f32, atol=5e-2, rtol=5e-2)

    print("KERNEL_OK")
</pallas_src>

<mosaic_0001>
module attributes {stable_mosaic.version = 11 : i64} {
  func.func @_mlp_fused_kernel(%arg0: i32, %arg1: memref<256x128xbf16, #tpu.memory_space<vmem>>, %arg2: memref<128x512xbf16, #tpu.memory_space<vmem>>, %arg3: memref<1x512xf32, #tpu.memory_space<vmem>>, %arg4: memref<512x256xbf16, #tpu.memory_space<vmem>>, %arg5: memref<1x256xf32, #tpu.memory_space<vmem>>, %arg6: memref<256x256xf32, #tpu.memory_space<vmem>>) attributes {dimension_semantics = [#tpu.dimension_semantics<parallel>], iteration_bounds = array<i64: 2>, scalar_prefetch = 0 : i64, scratch_operands = 0 : i64, tpu.core_type = #tpu.core_type<tc>, window_params = [{transform_indices = @transform_0, window_bounds = array<i64: 256, 128>}, {pipeline_mode = #tpu.pipeline_mode<synchronous>, transform_indices = @transform_1, window_bounds = array<i64: 128, 512>}, {pipeline_mode = #tpu.pipeline_mode<synchronous>, transform_indices = @transform_2, window_bounds = array<i64: 1, 512>}, {pipeline_mode = #tpu.pipeline_mode<synchronous>, transform_indices = @transform_3, window_bounds = array<i64: 512, 256>}, {pipeline_mode = #tpu.pipeline_mode<synchronous>, transform_indices = @transform_4, window_bounds = array<i64: 1, 256>}, {transform_indices = @transform_5, window_bounds = array<i64: 256, 256>}]} {
    %c0 = arith.constant 0 : index
    %c0_0 = arith.constant 0 : index
    %0 = vector.load %arg1[%c0, %c0_0] : memref<256x128xbf16, #tpu.memory_space<vmem>>, vector<256x128xbf16>
    %c0_1 = arith.constant 0 : index
    %c0_2 = arith.constant 0 : index
    %1 = vector.load %arg2[%c0_1, %c0_2] : memref<128x512xbf16, #tpu.memory_space<vmem>>, vector<128x512xbf16>
    %cst = arith.constant dense<0.000000e+00> : vector<256x512xf32>
    %2 = tpu.matmul %0, %1, %cst {dimension_numbers = #tpu.dot_dimension_numbers<[1], [0], [0], [1], [0, 0, 1, 1], [], []>} : vector<256x128xbf16>, vector<128x512xbf16>, vector<256x512xf32> -> vector<256x512xf32>
    %c0_3 = arith.constant 0 : index
    %c0_4 = arith.constant 0 : index
    %3 = vector.load %arg3[%c0_3, %c0_4] : memref<1x512xf32, #tpu.memory_space<vmem>>, vector<1x512xf32>
    %4 = vector.broadcast %3 : vector<1x512xf32> to vector<256x512xf32>
    %5 = arith.addf %2, %4 : vector<256x512xf32>
    %cst_5 = arith.constant 0.000000e+00 : f32
    %6 = vector.broadcast %cst_5 : f32 to vector<256x512xf32>
    %7 = arith.maximumf %5, %6 : vector<256x512xf32>
    %8 = arith.truncf %7 : vector<256x512xf32> to vector<256x512xbf16>
    %c0_6 = arith.constant 0 : index
    %c0_7 = arith.constant 0 : index
    %9 = vector.load %arg4[%c0_6, %c0_7] : memref<512x256xbf16, #tpu.memory_space<vmem>>, vector<512x256xbf16>
    %cst_8 = arith.constant dense<0.000000e+00> : vector<256x256xf32>
    %10 = tpu.matmul %8, %9, %cst_8 {dimension_numbers = #tpu.dot_dimension_numbers<[1], [0], [0], [1], [0, 0, 1, 1], [], []>} : vector<256x512xbf16>, vector<512x256xbf16>, vector<256x256xf32> -> vector<256x256xf32>
    %c0_9 = arith.constant 0 : index
    %c0_10 = arith.constant 0 : index
    %11 = vector.load %arg5[%c0_9, %c0_10] : memref<1x256xf32, #tpu.memory_space<vmem>>, vector<1x256xf32>
    %12 = vector.broadcast %11 : vector<1x256xf32> to vector<256x256xf32>
    %13 = arith.addf %10, %12 : vector<256x256xf32>
    %c0_11 = arith.constant 0 : index
    %c0_12 = arith.constant 0 : index
    %14 = vector.load %arg6[%c0_11, %c0_12] : memref<256x256xf32, #tpu.memory_space<vmem>>, vector<256x256xf32>
    tpu.vector_store %arg6[%c0_11, %c0_12], %13 {strides = array<i32>} : memref<256x256xf32, #tpu.memory_space<vmem>>, vector<256x256xf32>,
    return
  }
  func.func @transform_0(%arg0: i32) -> (i32, i32) {
    %c0_i32 = arith.constant 0 : i32
    %c0_i32_0 = arith.constant 0 : i32
    return %arg0, %c0_i32 : i32, i32
  }
  func.func @transform_1(%arg0: i32) -> (i32, i32) {
    %c0_i32 = arith.constant 0 : i32
    %c0_i32_0 = arith.constant 0 : i32
    %c0_i32_1 = arith.constant 0 : i32
    return %c0_i32, %c0_i32_0 : i32, i32
  }
  func.func @transform_2(%arg0: i32) -> (i32, i32) {
    %c0_i32 = arith.constant 0 : i32
    %c0_i32_0 = arith.constant 0 : i32
    %c0_i32_1 = arith.constant 0 : i32
    return %c0_i32, %c0_i32_0 : i32, i32
  }
  func.func @transform_3(%arg0: i32) -> (i32, i32) {
    %c0_i32 = arith.constant 0 : i32
    %c0_i32_0 = arith.constant 0 : i32
    %c0_i32_1 = arith.constant 0 : i32
    return %c0_i32, %c0_i32_0 : i32, i32
  }
  func.func @transform_4(%arg0: i32) -> (i32, i32) {
    %c0_i32 = arith.constant 0 : i32
    %c0_i32_0 = arith.constant 0 : i32
    %c0_i32_1 = arith.constant 0 : i32
    return %c0_i32, %c0_i32_0 : i32, i32
  }
  func.func @transform_5(%arg0: i32) -> (i32, i32) {
    %c0_i32 = arith.constant 0 : i32
    %c0_i32_0 = arith.constant 0 : i32
    return %arg0, %c0_i32 : i32, i32
  }
}

</mosaic_0001>

<bundles_post_ra>
// kernel: mlp_forward.1
= control target key start
LH: loop header
LB: loop body
LE: loop exit
PB: predicated region body
PF: predicated region fallthrough
CT: control target
= control target key end

     0   :  { %10 = vsyncpa [#allocation3], 0  ;;  %s4077_s0 = inlined_call_operand.hbm [shape: bf16[512,128], index: 0, kind: input, shape index: {}]   ;;  %s4078_s1 = inlined_call_operand.hbm [shape: bf16[128,512], index: 1, kind: input, shape index: {}]   ;;  %s4079_s2 = inlined_call_operand.hbm [shape: f32[1,512], index: 2, kind: input, shape index: {}]   ;;  %s4080_s3 = inlined_call_operand.hbm [shape: bf16[512,256], index: 3, kind: input, shape index: {}]   ;;  %s4081_s4 = inlined_call_operand.vmem [shape: f32[1,256], index: 4, kind: input, shape index: {}]   ;;  %s4082_s5 = inlined_call_operand.hbm [shape: f32[512,256], index: 5, kind: output, shape index: {}]  }
   0x1   :  { %12 = vsyncpa [#allocation3 + $0x1], 0 }
   0x2   :  { %13 = vsyncpa [#allocation6], 0 }
   0x3   :  { %14 = vsyncpa [#allocation9], 0 }
   0x4   :  { %15 = vsyncpa [#allocation4], 0 }
   0x5   :  { %17 = vsyncpa [#allocation4 + $0x1], 0  ;;  %s3364_s18 = smov 0   ;;  %s3366_s19 = smov 0  }
   0x6   :  { %s3368_s20 = smov 0   ;;  %s3370_s21 = smov 0  }
   0x7 LB: > { %s3385_s22 = sadd.s32 4294967295, %s3321_s21   ;;  %s2458_s23 = sadd.s32 4294967294, %s3321_s21   ;;  %s3321_s21 = sphi %s3370_s21, %s4162_s21   ;;  %s3317_s20 = sphi %s3368_s20, %s4161_s20   ;;  %s3313_s19 = sphi %s3366_s19, %s4160_s19   ;;  %s3309_s18 = sphi %s3364_s18, %s4159_s18  }
   0x8   : > { %p43_p0 = scmp.ne.s32.totalorder %s3313_s19, %s3309_s18  ;;  %p44_p1 = scmp.eq.s32.totalorder %s3385_s22, 0 }
   0x9   : > { %p151_p2 = scmp.eq.s32.totalorder %s3385_s22, 1  ;;  %p157_p3 = scmp.eq.s32.totalorder %s2458_s23, 1 }
   0xa   : > { %p3394_p4 = por %p44_p1, %p43_p0  ;;  %p2459_p5 = scmp.ge.s32.totalorder %s3321_s21, 1 }
   0xb   : > { %p3399_p6 = por %p157_p3, %p43_p0  ;;  %p164_p7 = scmp.lt.s32.totalorder %s3321_s21, 3 }
   0xc   : > { %s175_s28 = sshll.u32 %s4078_s1, 4  ;;  %s3323_s30 = smov [#allocation5]   ;;  %s176_s28 = int_to_ptr.hbm [resolvable:$true] %s175_s28 }
   0xd   : > { %p3407_p8 = pnand %p2459_p5, %p164_p7  ;;  %s177_s6 = sshll.u32 %s3323_s30, 4  ;;  %s178_s6 = int_to_ptr.vmem [resolvable:$true] %s177_s6 }
   0xe   : > { %s190_s10 = sshll.u32 %s4079_s2, 4  ;;  %s3324_s11 = smov 256   ;;  %s191_s10 = int_to_ptr.hbm [resolvable:$true] %s190_s10 }
   0xf   : > { %p3058_p9 = pneg %p3407_p8  ;;  %s3325_s12 = smov 16  }
  0x10   : > { %s3326_s13 = smov [#allocation7]   ;;  %s201_s17 = sshll.u32 %s4080_s3, 4  ;;  %s202_s17 = int_to_ptr.hbm [resolvable:$true] %s201_s17 }
  0x11   : > { %p3415_p10 = pnand %p3058_p9, %p44_p1  ;;  %s192_s14 = sshll.u32 %s3326_s13, 4  ;;  %s193_s14 = int_to_ptr.vmem [resolvable:$true] %s192_s14 }
  0x12   : > { %s3327_s23 = smov [#allocation8]   ;;  %s3328_s27 = smov 128  }
  0x13   : > { %3061 = dma.hbm_to_vmem [thread:$0]  (!%p3415_p10), %s176_s28, 4096, %s178_s6, [#allocation6], %s3324_s11, %s3324_s11, %s3325_s12  }
  0x14   : > { %3064 = dma.hbm_to_vmem [thread:$0]  (!%p3415_p10), %s191_s10, 64, %s193_s14, [#allocation6]  }
  0x15   : > { %s203_s26 = sshll.u32 %s3327_s23, 4  ;;  %s3329_s28 = smov 8   ;;  %s204_s26 = int_to_ptr.vmem [resolvable:$true] %s203_s26 }
  0x16   : > { %3067 = dma.hbm_to_vmem [thread:$0]  (!%p3415_p10), %s202_s17, 8192, %s204_s26, [#allocation9], %s3328_s27, %s3328_s27, %s3329_s28  }
  0x17   : > { %s3433_s30 = sadd.s32 1, %s3321_s21   ;;  %s30_s8 = sadd.s32 1, %s3317_s20 }
  0x18   : > { %s27_s6 = ssub.s32 %s3321_s21, %s3433_s30  ;;  %p37_p13 = scmp.ne.s32.totalorder %s3317_s20, %s3313_s19 }
  0x19   : > { %p28_p12 = scmp.eq.s32.totalorder %s27_s6, 0  ;;  %p38_p0 = scmp.eq.s32.totalorder %s3321_s21, 0 }
  0x1a   : > { %p3079_p3 = scmp.lt.s32.totalorder %s3321_s21, 2  ;;  %p3447_p7 = por %p151_p2, %p37_p13 }
  0x1b   : > { %s3443_s9 = scalar_select %p28_p12, %s3317_s20, %s30_s8  }
  0x1c   : > { %p39_p5 = por %p38_p0, %p37_p13  ;;  %s220_s7 = sand.u32 1, %s3317_s20  }
  0x1d   : > { %s2927_s11 = sshll.u32 %s3321_s21, 7  ;;  %s2464_s12 = sshll.u32 %s220_s7, 7 }
  0x1e   : > { %s229_s15 = scalar_lea.hbm %s4077_s0, %s2927_s11  ;;  %s224_s17 = scalar_lea.vmem [#allocation2], %s2464_s12 }
  0x1f   : > { %s230_s16 = sshll.u32 %s229_s15, 4  ;;  %s232_s23 = sshll.u32 %s224_s17, 4  ;;  %s231_s16 = int_to_ptr.hbm [resolvable:$true] %s230_s16  ;;  %s233_s23 = int_to_ptr.vmem [resolvable:$true] %s232_s23 }
  0x20   : > { %p3458_p9 = pnand %p3079_p3, %p39_p5  ;;  %s221_s27 = scalar_lea.sflag [#allocation3], %s220_s7 }
  0x21   : > { %s3217_s28 = sshra.s32 %s231_s16, 4  ;;  %s3224_s12 = scalar_lea.hbm %s4077_s0, 256  ;;  %s3218_s28 = int_to_ptr.hbm [resolvable:$true] %s3217_s28 }
  0x22   : > { %s3219_s6 = scalar_lea.hbm %s3218_s28, 128  ;;  %p3221_p10 = pneg %p3458_p9 }
  0x23   : > { %p3220_p2 = scmp.ne.s32.totalorder %s3218_s28, %s3219_s6  ;;  %p3225_p0 = scmp.lt.s32.totalorder %s3218_s28, %s4077_s0 }
  0x24   : > { %p3226_p3 = scmp.lt.s32.totalorder %s3224_s12, %s3219_s6 }
  0x25   : > { %p3222_p12 = pnand %p3221_p10, %p3220_p2 }
  0x26   : > { %p3227_p5 = por %p3226_p3, %p3225_p0 }
  0x27   : > { %p3223_p13 = pneg %p3222_p12 }
  0x29   : > { %p3228_p11 = pnand %p3227_p5, %p3223_p13 }
  0x2b   : > { %3231 = shalt.err (!%p3228_p11)
}
  0x2c   : > { %s3330_s7 = smov 64   ;;  %s3331_s15 = smov 4  }
  0x2d   : > { %3071 = dma.hbm_to_vmem [thread:$0]  (!%p3458_p9), %s231_s16, 2048, %s233_s23, %s221_s27, %s3330_s7, %s3330_s7, %s3331_s15  }
  0x2e   : > { %244 = sbr.rel (%p3407_p8) target bundleno = 995 (0x3e3), region = 40 }
  0x33   : > { %s3475_s17 = sand.u32 1, %s3313_s19  }
  0x34   : > { %s2468_s8 = sshll.u32 %s3475_s17, 7  ;;  %s247_s28 = scalar_lea.sflag [#allocation3], %s3475_s17 }
  0x35   : > { %s3479_s6 = scalar_lea.vmem [#allocation2], %s2468_s8 }
  0x36   : > { %3292 = dma.done.wait (%p3394_p4), %s247_s28, 2048  }
  0x37   : > { %3294 = vsyncadd (%p3394_p4), %s247_s28, 4294965248 }
  0x38   : > { %3296 = dma.done.wait (%p44_p1), [#allocation6], 4160  }
  0x39   : > { %3298 = vsyncadd (%p44_p1), [#allocation6], 4294963136 }
  0x3a   : > { %3300 = dma.done.wait (%p44_p1), [#allocation9], 8192  }
  0x3b   : > { %3302 = vsyncadd (%p44_p1), [#allocation9], 4294959104  ;;  %v2651_v0 = vld [vmem:[#allocation5 + $0xe0] sm:$0xf]  ;;  %v2974_v1 = vld [vmem:[#allocation5 + $0xec] sm:$0xf0] }
  0x3c   : > { %v2972_v2 = vld [vmem:[#allocation5 + $0xe4] sm:$0xf]  ;;  %v2652_v3 = vor.u32 %v2974_v1, %v2651_v0  ;;  %v2653_v4 = vld [vmem:[#allocation5 + $0xf0] sm:$0xf0]  ;;  %v2659_v5 = vld [vmem:[#allocation5 + $0xe8] sm:$0xf] }
  0x3d   : > { %v2975_v6 = vld [vmem:[#allocation5 + $0xf4] sm:$0xf0]  ;;  %v2656_v7 = vor.u32 %v2972_v2, %v2653_v4  ;;  %v2973_v9 = vld [vmem:[#allocation5 + $0xec] sm:$0xf]  ;;  %v2661_v10 = vld [vmem:[#allocation5 + $0xf8] sm:$0xf0] }
  0x3e   : > { %v2660_v8 = vor.u32 %v2975_v6, %v2659_v5  ;;  %v2635_v11 = vld [vmem:[#allocation5 + $0xc0] sm:$0xf]  ;;  %625 = vmatpush.bf16.msra.mxu0 %v2652_v3  ;;  %v2664_v12 = vor.u32 %v2973_v9, %v2661_v10  ;;  %v2970_v13 = vld [vmem:[#allocation5 + $0xcc] sm:$0xf0]  ;;  %v2968_v14 = vld [vmem:[#allocation5 + $0xc4] sm:$0xf] }
  0x3f   : > { %v2637_v15 = vld [vmem:[#allocation5 + $0xd0] sm:$0xf0]  ;;  %714 = vmatpush.bf16.msra.mxu1 %v2656_v7  ;;  %v2636_v16 = vor.u32 %v2970_v13, %v2635_v11  ;;  %v2643_v18 = vld [vmem:[#allocation5 + $0xc8] sm:$0xf]  ;;  %v2971_v19 = vld [vmem:[#allocation5 + $0xd4] sm:$0xf0] }
  0x40   : > { %803 = vmatpush.bf16.msra.mxu2 %v2660_v8  ;;  %v2640_v17 = vor.u32 %v2968_v14, %v2637_v15  ;;  %v2969_v20 = vld [vmem:[#allocation5 + $0xcc] sm:$0xf]  ;;  %892 = vmatpush.bf16.msra.mxu3 %v2664_v12  ;;  %v2644_v21 = vor.u32 %v2971_v19, %v2643_v18  ;;  %v2645_v22 = vld [vmem:[#allocation5 + $0xd8] sm:$0xf0]  ;;  %v2619_v23 = vld [vmem:[#allocation5 + $0xa0] sm:$0xf] }
  0x41   : > { %v2966_v24 = vld [vmem:[#allocation5 + $0xac] sm:$0xf0]  ;;  %v2648_v25 = vor.u32 %v2969_v20, %v2645_v22  ;;  %v2964_v26 = vld [vmem:[#allocation5 + $0xa4] sm:$0xf]  ;;  %v2621_v27 = vld [vmem:[#allocation5 + $0xb0] sm:$0xf0] }
  0x42   : > { %v2627_v28 = vld [vmem:[#allocation5 + $0xa8] sm:$0xf]  ;;  %626 = vmatpush.bf16.msra.mxu0 %v2636_v16  ;;  %v2620_v29 = vor.u32 %v2966_v24, %v2619_v23  ;;  %v2967_v30 = vld [vmem:[#allocation5 + $0xb4] sm:$0xf0]  ;;  %v2965_v31 = vld [vmem:[#allocation5 + $0xac] sm:$0xf]  ;;  %v2624_v33 = vor.u32 %v2964_v26, %v2621_v27 }
  0x43   : > { %v2629_v32 = vld [vmem:[#allocation5 + $0xb8] sm:$0xf0]  ;;  %715 = vmatpush.bf16.msra.mxu1 %v2640_v17  ;;  %v2628_v34 = vor.u32 %v2967_v30, %v2627_v28  ;;  %v2603_v35 = vld [vmem:[#allocation5 + $0x80] sm:$0xf]  ;;  %v2962_v36 = vld [vmem:[#allocation5 + $0x8c] sm:$0xf0] }
  0x44   : > { %804 = vmatpush.bf16.msra.mxu2 %v2644_v21  ;;  %v2960_v37 = vld [vmem:[#allocation5 + $0x84] sm:$0xf]  ;;  %893 = vmatpush.bf16.msra.mxu3 %v2648_v25  ;;  %v2632_v38 = vor.u32 %v2965_v31, %v2629_v32  ;;  %v2605_v39 = vld [vmem:[#allocation5 + $0x90] sm:$0xf0]  ;;  %v2611_v40 = vld [vmem:[#allocation5 + $0x88] sm:$0xf]  ;;  %v2604_v44 = vor.u32 %v2962_v36, %v2603_v35 }
  0x45   : > { %v2963_v41 = vld [vmem:[#allocation5 + $0x94] sm:$0xf0]  ;;  %v2961_v42 = vld [vmem:[#allocation5 + $0x8c] sm:$0xf]  ;;  %v2613_v43 = vld [vmem:[#allocation5 + $0x98] sm:$0xf0]  ;;  %v2608_v45 = vor.u32 %v2960_v37, %v2605_v39 }
  0x46   : > { %627 = vmatpush.bf16.msra.mxu0 %v2620_v29  ;;  %v2612_v46 = vor.u32 %v2963_v41, %v2611_v40  ;;  %v2587_v47 = vld [vmem:[#allocation5 + $0x60] sm:$0xf]  ;;  %v2958_v48 = vld [vmem:[#allocation5 + $0x6c] sm:$0xf0]  ;;  %v2956_v49 = vld [vmem:[#allocation5 + $0x64] sm:$0xf]  ;;  %v2616_v50 = vor.u32 %v2961_v42, %v2613_v43 }
  0x47   : > { %716 = vmatpush.bf16.msra.mxu1 %v2624_v33  ;;  %v2589_v51 = vld [vmem:[#allocation5 + $0x70] sm:$0xf0]  ;;  %v2595_v52 = vld [vmem:[#allocation5 + $0x68] sm:$0xf]  ;;  %v2959_v53 = vld [vmem:[#allocation5 + $0x74] sm:$0xf0]  ;;  %v2588_v56 = vor.u32 %v2958_v48, %v2587_v47 }
  0x48   : > { %805 = vmatpush.bf16.msra.mxu2 %v2628_v34  ;;  %894 = vmatpush.bf16.msra.mxu3 %v2632_v38  ;;  %v2957_v54 = vld [vmem:[#allocation5 + $0x6c] sm:$0xf]  ;;  %v2597_v55 = vld [vmem:[#allocation5 + $0x78] sm:$0xf0]  ;;  %v2592_v57 = vor.u32 %v2956_v49, %v2589_v51  ;;  %v2596_v58 = vor.u32 %v2959_v53, %v2595_v52  ;;  %v2571_v59 = vld [vmem:[#allocation5 + $0x40] sm:$0xf] }
  0x49   : > { %v2954_v60 = vld [vmem:[#allocation5 + $0x4c] sm:$0xf0]  ;;  %v2952_v61 = vld [vmem:[#allocation5 + $0x44] sm:$0xf]  ;;  %v2600_v62 = vor.u32 %v2957_v54, %v2597_v55  ;;  %v2573_v63 = vld [vmem:[#allocation5 + $0x50] sm:$0xf0] }
  0x4a   : > { %628 = vmatpush.bf16.msra.mxu0 %v2604_v44  ;;  %v2579_v0 = vld [vmem:[#allocation5 + $0x48] sm:$0xf]  ;;  %v2955_v1 = vld [vmem:[#allocation5 + $0x54] sm:$0xf0]  ;;  %v2953_v2 = vld [vmem:[#allocation5 + $0x4c] sm:$0xf]  ;;  %v2572_v4 = vor.u32 %v2954_v60, %v2571_v59  ;;  %v2576_v5 = vor.u32 %v2952_v61, %v2573_v63 }
  0x4b   : > { %717 = vmatpush.bf16.msra.mxu1 %v2608_v45  ;;  %v2581_v3 = vld [vmem:[#allocation5 + $0x58] sm:$0xf0]  ;;  %v2580_v6 = vor.u32 %v2955_v1, %v2579_v0  ;;  %v2555_v7 = vld [vmem:[#allocation5 + $0x20] sm:$0xf]  ;;  %v2950_v8 = vld [vmem:[#allocation5 + $0x2c] sm:$0xf0] }
  0x4c   : > { %806 = vmatpush.bf16.msra.mxu2 %v2612_v46  ;;  %895 = vmatpush.bf16.msra.mxu3 %v2616_v50  ;;  %v2948_v9 = vld [vmem:[#allocation5 + $0x24] sm:$0xf]  ;;  %v2584_v10 = vor.u32 %v2953_v2, %v2581_v3  ;;  %v2557_v11 = vld [vmem:[#allocation5 + $0x30] sm:$0xf0]  ;;  %v2563_v12 = vld [vmem:[#allocation5 + $0x28] sm:$0xf]  ;;  %v2556_v16 = vor.u32 %v2950_v8, %v2555_v7 }
  0x4d   : > { %v2951_v13 = vld [vmem:[#allocation5 + $0x34] sm:$0xf0]  ;;  %v2949_v14 = vld [vmem:[#allocation5 + $0x2c] sm:$0xf]  ;;  %v2565_v15 = vld [vmem:[#allocation5 + $0x38] sm:$0xf0]  ;;  %v2560_v18 = vor.u32 %v2948_v9, %v2557_v11 }
  0x4e   : > { %629 = vmatpush.bf16.msra.mxu0 %v2588_v56  ;;  %v2539_v17 = vld [vmem:[#allocation5] sm:$0xf]  ;;  %v2564_v19 = vor.u32 %v2951_v13, %v2563_v12  ;;  %v2946_v20 = vld [vmem:[#allocation5 + $0xc] sm:$0xf0]  ;;  %v2944_v21 = vld [vmem:[#allocation5 + $0x4] sm:$0xf]  ;;  %v2568_v23 = vor.u32 %v2949_v14, %v2565_v15 }
  0x4f   : > { %718 = vmatpush.bf16.msra.mxu1 %v2592_v57  ;;  %v2541_v22 = vld [vmem:[#allocation5 + $0x10] sm:$0xf0]  ;;  %v2547_v24 = vld [vmem:[#allocation5 + $0x8] sm:$0xf]  ;;  %v2947_v25 = vld [vmem:[#allocation5 + $0x14] sm:$0xf0]  ;;  %v2540_v30 = vor.u32 %v2946_v20, %v2539_v17 }
  0x50   : > { %807 = vmatpush.bf16.msra.mxu2 %v2596_v58  ;;  %896 = vmatpush.bf16.msra.mxu3 %v2600_v62  ;;  %v2945_v26 = vld [vmem:[#allocation5 + $0xc] sm:$0xf]  ;;  %v2549_v27 = vld [vmem:[#allocation5 + $0x18] sm:$0xf0]  ;;  %v2851_v28 = vld [vmem:[#allocation8 + $0x170] sm:$0xf]  ;;  %v2544_v33 = vor.u32 %v2944_v21, %v2541_v22  ;;  %v2548_v34 = vor.u32 %v2947_v25, %v2547_v24 }
  0x51   : > { %v3023_v29 = vld [vmem:[#allocation8 + $0x174] sm:$0xf0]  ;;  %v2915_v31 = vld [vmem:[#allocation8 + $0x1f0] sm:$0xf]  ;;  %v2552_v35 = vor.u32 %v2945_v26, %v2549_v27  ;;  %v2928_v39 = vld [vmem:[%s3479_s6] sm:$0xff]  ;;  %s2472_s16 = sshll.u32 %s3475_s17, 9 }
  0x52   : > { %630 = vmatpush.bf16.msra.mxu0 %v2572_v4  ;;  %v3039_v32 = vld [vmem:[#allocation8 + $0x1f4] sm:$0xf0]  ;;  %v2852_v36 = vor.u32 %v3023_v29, %v2851_v28  ;;  %v2723_v37 = vld [vmem:[#allocation8 + $0x70] sm:$0xf]  ;;  %v2843_v45 = vld [vmem:[#allocation8 + $0x160] sm:$0xf] }
  0x53   : > { %719 = vmatpush.bf16.msra.mxu1 %v2576_v5  ;;  %v2991_v38 = vld [vmem:[#allocation8 + $0x74] sm:$0xf0]  ;;  %v2916_v40 = vor.u32 %v3039_v32, %v2915_v31  ;;  %v2787_v41 = vld [vmem:[#allocation8 + $0xf0] sm:$0xf]  ;;  %v3021_v46 = vld [vmem:[#allocation8 + $0x164] sm:$0xf0] }
  0x54   : > { %808 = vmatpush.bf16.msra.mxu2 %v2580_v6  ;;  %897 = vmatpush.bf16.msra.mxu3 %v2584_v10  ;;  %v3007_v42 = vld [vmem:[#allocation8 + $0xf4] sm:$0xf0]  ;;  %v2724_v43 = vor.u32 %v2991_v38, %v2723_v37  ;;  %v2715_v47 = vld [vmem:[#allocation8 + $0x60] sm:$0xf]  ;;  %v2844_v48 = vor.u32 %v3021_v46, %v2843_v45  ;;  %v2989_v49 = vld [vmem:[#allocation8 + $0x64] sm:$0xf0] }
  0x55   : > { %v2788_v44 = vor.u32 %v3007_v42, %v2787_v41  ;;  %v2907_v50 = vld [vmem:[#allocation8 + $0x1e0] sm:$0xf]  ;;  %v3037_v51 = vld [vmem:[#allocation8 + $0x1e4] sm:$0xf0]  ;;  %v2716_v52 = vor.u32 %v2989_v49, %v2715_v47  ;;  %v2930_v58 = vld [vmem:[%s3479_s6 + $0x10] sm:$0xff]  ;;  %s3820_s23 = scalar_lea.vmem [#allocation10], %s2472_s16 }
  0x56   : > { %631 = vmatpush.bf16.msra.mxu0 %v2556_v16  ;;  %v2908_v53 = vor.u32 %v3037_v51, %v2907_v50  ;;  %v2779_v54 = vld [vmem:[#allocation8 + $0xe0] sm:$0xf]  ;;  %v3005_v55 = vld [vmem:[#allocation8 + $0xe4] sm:$0xf0]  ;;  %v2835_v59 = vld [vmem:[#allocation8 + $0x150] sm:$0xf] }
  0x57   : > { %720 = vmatpush.bf16.msra.mxu1 %v2560_v18  ;;  %v2780_v56 = vor.u32 %v3005_v55, %v2779_v54  ;;  %v2929_v57 = vld [vmem:[%s3479_s6 + $0x8] sm:$0xff]  ;;  %v3019_v60 = vld [vmem:[#allocation8 + $0x154] sm:$0xf0]  ;;  %v2707_v61 = vld [vmem:[#allocation8 + $0x50] sm:$0xf]  ;;  %s3041_s26 = sshll.u32 %s3385_s22, 9 }
  0x58   : > { %809 = vmatpush.bf16.msra.mxu2 %v2564_v19  ;;  %898 = vmatpush.bf16.msra.mxu3 %v2568_v23  ;;  %v2836_v62 = vor.u32 %v3019_v60, %v2835_v59  ;;  %v2987_v63 = vld [vmem:[#allocation8 + $0x54] sm:$0xf0]  ;;  %v2899_v0 = vld [vmem:[#allocation8 + $0x1d0] sm:$0xf]  ;;  %v2932_v8 = vld [vmem:[%s3479_s6 + $0x20] sm:$0xff]  ;;  %s2352_s12 = scalar_lea.hbm %s4082_s5, %s3041_s26  ;;  %s2353_s13 = sshll.u32 %s3820_s23, 4  ;;  %s2354_s13 = int_to_ptr.vmem [resolvable:$true] %s2353_s13 }
  0x59   : > { %v3035_v1 = vld [vmem:[#allocation8 + $0x1d4] sm:$0xf0]  ;;  %v2708_v2 = vor.u32 %v2987_v63, %v2707_v61  ;;  %v2771_v4 = vld [vmem:[#allocation8 + $0xd0] sm:$0xf]  ;;  %v2827_v9 = vld [vmem:[#allocation8 + $0x140] sm:$0xf] }
  0x5a   : > { %632 = vmatpush.bf16.msra.mxu0 %v2540_v30  ;;  %v2900_v3 = vor.u32 %v3035_v1, %v2899_v0  ;;  %v3003_v5 = vld [vmem:[#allocation8 + $0xd4] sm:$0xf0]  ;;  %v3017_v10 = vld [vmem:[#allocation8 + $0x144] sm:$0xf0]  ;;  %v2699_v11 = vld [vmem:[#allocation8 + $0x40] sm:$0xf] }
  0x5b   : > { %721 = vmatpush.bf16.msra.mxu1 %v2544_v33  ;;  %v2772_v6 = vor.u32 %v3003_v5, %v2771_v4  ;;  %v2931_v7 = vld [vmem:[%s3479_s6 + $0x18] sm:$0xff]  ;;  %v2828_v12 = vor.u32 %v3017_v10, %v2827_v9  ;;  %v2985_v13 = vld [vmem:[#allocation8 + $0x44] sm:$0xf0]  ;;  %v2891_v14 = vld [vmem:[#allocation8 + $0x1c0] sm:$0xf]  ;;  %s2355_s14 = sshll.u32 %s2352_s12, 4  ;;  %s2356_s14 = int_to_ptr.hbm [resolvable:$true] %s2355_s14 }
  0x5c   : > { %810 = vmatpush.bf16.msra.mxu2 %v2548_v34  ;;  %899 = vmatpush.bf16.msra.mxu3 %v2552_v35  ;;  %v3033_v15 = vld [vmem:[#allocation8 + $0x1c4] sm:$0xf0]  ;;  %v2700_v16 = vor.u32 %v2985_v13, %v2699_v11  ;;  %v2763_v18 = vld [vmem:[#allocation8 + $0xc0] sm:$0xf]  ;;  %v2934_v22 = vld [vmem:[%s3479_s6 + $0x30] sm:$0xff]  ;;  %s2340_s22 = scalar_lea.sflag [#allocation4], %s3475_s17 }
  0x5d   : > { %633 = vmatmul.bf16.vlgmr.msra.gmra.mxu0 %v2928_v39  ;;  %v2892_v17 = vor.u32 %v3033_v15, %v2891_v14  ;;  %v3001_v19 = vld [vmem:[#allocation8 + $0xc4] sm:$0xf0]  ;;  %v2819_v23 = vld [vmem:[#allocation8 + $0x130] sm:$0xf]  ;;  %v3015_v24 = vld [vmem:[#allocation8 + $0x134] sm:$0xf0] }
  0x5e   : > { %722 = vmatmul.bf16.vlgmr.msra.gmra.mxu1 %v2928_v39  ;;  %1563 = vmatpush.bf16.msrb.mxu0 %v2724_v43  ;;  %v2764_v20 = vor.u32 %v3001_v19, %v2763_v18  ;;  %v2933_v21 = vld [vmem:[%s3479_s6 + $0x28] sm:$0xff]  ;;  %v2691_v25 = vld [vmem:[#allocation8 + $0x30] sm:$0xf]  ;;  %v2820_v26 = vor.u32 %v3015_v24, %v2819_v23  ;;  %v2983_v27 = vld [vmem:[#allocation8 + $0x34] sm:$0xf0]  ;;  %s3261_s7 = sshra.s32 %s2356_s14, 4  ;;  %s3262_s7 = int_to_ptr.hbm [resolvable:$true] %s3261_s7 }
  0x5f   : > { %811 = vmatmul.bf16.vlgmr.msra.gmra.mxu2 %v2928_v39  ;;  %900 = vmatmul.bf16.vlgmr.msra.gmra.mxu3 %v2928_v39  ;;  %v2883_v28 = vld [vmem:[#allocation8 + $0x1b0] sm:$0xf]  ;;  %v3031_v29 = vld [vmem:[#allocation8 + $0x1b4] sm:$0xf0]  ;;  %v2692_v30 = vor.u32 %v2983_v27, %v2691_v25  ;;  %v359_v37 = vld [vmem:[#allocation7] sm:$0xf]  ;;  %p3268_p11 = scmp.lt.s32.totalorder %s3262_s7, %s4082_s5 }
  0x60   : > { %1741 = vmatpush.bf16.msrb.mxu2 %v2852_v36  ;;  %1830 = vmatpush.bf16.msrb.mxu3 %v2916_v40  ;;  %v2884_v31 = vor.u32 %v3031_v29, %v2883_v28  ;;  %v2755_v32 = vld [vmem:[#allocation8 + $0xb0] sm:$0xf]  ;;  %v2999_v33 = vld [vmem:[#allocation8 + $0xb4] sm:$0xf0]  ;;  %v2936_v36 = vld [vmem:[%s3479_s6 + $0x40] sm:$0xff]  ;;  %v3502_v40 = vperm.slane %v359_v37, 0 }
  0x61   : > { %1652 = vmatpush.bf16.msrb.mxu1 %v2788_v44  ;;  %v2756_v34 = vor.u32 %v2999_v33, %v2755_v32  ;;  %v2935_v35 = vld [vmem:[%s3479_s6 + $0x38] sm:$0xff]  ;;  %v3504_v41 = vperm.slane %v359_v37, 1  ;;  %v2811_v42 = vld [vmem:[#allocation8 + $0x120] sm:$0xf]  ;;  %v3013_v43 = vld [vmem:[#allocation8 + $0x124] sm:$0xf0] }
  0x62   : > { %1564 = vmatpush.bf16.msrb.mxu0 %v2716_v52  ;;  %v2683_v44 = vld [vmem:[#allocation8 + $0x20] sm:$0xf]  ;;  %v2812_v45 = vor.u32 %v3013_v43, %v2811_v42  ;;  %v2981_v46 = vld [vmem:[#allocation8 + $0x24] sm:$0xf0]  ;;  %v3511_v59 = vperm.slane %v359_v37, 3  ;;  %s3263_s15 = scalar_lea.hbm %s3262_s7, 512 }
  0x63   : > { %v2875_v47 = vld [vmem:[#allocation8 + $0x1a0] sm:$0xf]  ;;  %v2684_v51 = vor.u32 %v2981_v46, %v2683_v44  ;;  %v2997_v0 = vld [vmem:[#allocation8 + $0xa4] sm:$0xf0]  ;;  %p3264_p1 = scmp.ne.s32.totalorder %s3262_s7, %s3263_s15 }
  0x64   : > { %1742 = vmatpush.bf16.msrb.mxu2 %v2844_v48  ;;  %1831 = vmatpush.bf16.msrb.mxu3 %v2908_v53  ;;  %v3029_v48 = vld [vmem:[#allocation8 + $0x1a4] sm:$0xf0]  ;;  %v2747_v63 = vld [vmem:[#allocation8 + $0xa0] sm:$0xf] }
  0x65   : > { %1653 = vmatpush.bf16.msrb.mxu1 %v2780_v56  ;;  %v2876_v52 = vor.u32 %v3029_v48, %v2875_v47  ;;  %v2937_v9 = vld [vmem:[%s3479_s6 + $0x48] sm:$0xff]  ;;  %p3265_p4 = pnand %p3264_p1, %p3447_p7 }
  0x66   : > { %1565 = vmatpush.bf16.msrb.mxu0 %v2708_v2 }
  0x67   : > { %p3266_p8 = pneg %p3265_p4 }
  0x68   : > { %1743 = vmatpush.bf16.msrb.mxu2 %v2836_v62  ;;  %1832 = vmatpush.bf16.msrb.mxu3 %v2900_v3  ;;  %v2748_v3 = vor.u32 %v2997_v0, %v2747_v63 }
  0x69   : > { %1654 = vmatpush.bf16.msrb.mxu1 %v2772_v6 }
  0x6a   : > { %1566 = vmatpush.bf16.msrb.mxu0 %v2700_v16 }
  0x6c   : > { %1744 = vmatpush.bf16.msrb.mxu2 %v2828_v12  ;;  %1833 = vmatpush.bf16.msrb.mxu3 %v2892_v17 }
  0x6d   : > { %638 = vmatmul.bf16.gmra.mxu0 %v2929_v57  ;;  %1655 = vmatpush.bf16.msrb.mxu1 %v2764_v20 }
  0x6e   : > { %727 = vmatmul.bf16.gmra.mxu1 %v2929_v57  ;;  %1567 = vmatpush.bf16.msrb.mxu0 %v2692_v30 }
  0x6f   : > { %816 = vmatmul.bf16.gmra.mxu2 %v2929_v57  ;;  %905 = vmatmul.bf16.gmra.mxu3 %v2929_v57 }
  0x70   : > { %1745 = vmatpush.bf16.msrb.mxu2 %v2820_v26  ;;  %1834 = vmatpush.bf16.msrb.mxu3 %v2884_v31 }
  0x71   : > { %1656 = vmatpush.bf16.msrb.mxu1 %v2756_v34 }
  0x72   : > { %1568 = vmatpush.bf16.msrb.mxu0 %v2684_v51  ;;  %v2803_v51 = vld [vmem:[#allocation8 + $0x110] sm:$0xf] }
  0x74   : > { %1746 = vmatpush.bf16.msrb.mxu2 %v2812_v45  ;;  %1835 = vmatpush.bf16.msrb.mxu3 %v2876_v52  ;;  %v3011_v52 = vld [vmem:[#allocation8 + $0x114] sm:$0xf0] }
  0x75   : > { %1657 = vmatpush.bf16.msrb.mxu1 %v2748_v3 }
  0x7d   : > { %643 = vmatmul.bf16.gmra.mxu0 %v2930_v58 }
  0x7e   : > { %732 = vmatmul.bf16.gmra.mxu1 %v2930_v58 }
  0x7f   : > { %821 = vmatmul.bf16.gmra.mxu2 %v2930_v58  ;;  %910 = vmatmul.bf16.gmra.mxu3 %v2930_v58  ;;  %v3509_v58 = vperm.slane %v359_v37, 2 }
  0x8d   : > { %648 = vmatmul.bf16.gmra.mxu0 %v2931_v7 }
  0x8e   : > { %737 = vmatmul.bf16.gmra.mxu1 %v2931_v7 }
  0x8f   : > { %826 = vmatmul.bf16.gmra.mxu2 %v2931_v7  ;;  %915 = vmatmul.bf16.gmra.mxu3 %v2931_v7 }
  0x9d   : > { %653 = vmatmul.bf16.gmra.mxu0 %v2932_v8 }
  0x9e   : > { %742 = vmatmul.bf16.gmra.mxu1 %v2932_v8 }
  0x9f   : > { %831 = vmatmul.bf16.gmra.mxu2 %v2932_v8  ;;  %920 = vmatmul.bf16.gmra.mxu3 %v2932_v8 }
  0xad   : > { %658 = vmatmul.bf16.gmra.mxu0 %v2933_v21 }
  0xae   : > { %747 = vmatmul.bf16.gmra.mxu1 %v2933_v21 }
  0xaf   : > { %836 = vmatmul.bf16.gmra.mxu2 %v2933_v21  ;;  %925 = vmatmul.bf16.gmra.mxu3 %v2933_v21 }
  0xbd   : > { %663 = vmatmul.bf16.gmra.mxu0 %v2934_v22 }
  0xbe   : > { %752 = vmatmul.bf16.gmra.mxu1 %v2934_v22 }
  0xbf   : > { %841 = vmatmul.bf16.gmra.mxu2 %v2934_v22  ;;  %930 = vmatmul.bf16.gmra.mxu3 %v2934_v22 }
  0xcd   : > { %668 = vmatmul.bf16.gmra.mxu0 %v2935_v35 }
  0xce   : > { %757 = vmatmul.bf16.gmra.mxu1 %v2935_v35 }
  0xcf   : > { %846 = vmatmul.bf16.gmra.mxu2 %v2935_v35  ;;  %935 = vmatmul.bf16.gmra.mxu3 %v2935_v35 }
  0xda   : > { %v634_v38 = vpop.f32.mrf.mxu0 }
  0xdb   : > { %v723_v39 = vpop.f32.mrf.mxu1  ;;  %v635_v49 = vadd.f32 %v634_v38, %v3502_v40  ;;  %v2938_v38 = vld [vmem:[%s3479_s6 + $0x50] sm:$0xff] }
  0xdc   : > { %v724_v53 = vadd.f32 %v723_v39, %v3504_v41 }
  0xdd   : > { %673 = vmatmul.bf16.gmra.mxu0 %v2936_v36  ;;  %v981_v61 = vmax.f32 %v635_v49, 0.0 }
  0xde   : > { %762 = vmatmul.bf16.gmra.mxu1 %v2936_v36  ;;  %v982_v1 = vmax.f32 %v724_v53, 0.0  ;;  %v2675_v53 = vld [vmem:[#allocation8 + $0x10] sm:$0xf] }
  0xdf   : > { %851 = vmatmul.bf16.gmra.mxu2 %v2936_v36  ;;  %940 = vmatmul.bf16.gmra.mxu3 %v2936_v36 }
  0xe2   : > { %v812_v50 = vpop.f32.mrf.mxu2  ;;  %v901_v54 = vpop.f32.mrf.mxu3 }
  0xe3   : > { %v636_v55 = vpop.f32.mrf.mxu0  ;;  %v725_v57 = vpop.f32.mrf.mxu1  ;;  %v813_v5 = vadd.f32 %v812_v50, %v3509_v58  ;;  %v902_v7 = vadd.f32 %v901_v54, %v3511_v59 }
  0xe4   : > { %v637_v56 = vadd.f32 %v636_v55, %v3502_v40  ;;  %v726_v60 = vadd.f32 %v725_v57, %v3504_v41  ;;  %v2804_v55 = vor.u32 %v3011_v52, %v2803_v51  ;;  %v2867_v57 = vld [vmem:[#allocation8 + $0x190] sm:$0xf] }
  0xe5   : > { %v983_v15 = vmax.f32 %v813_v5, 0.0  ;;  %v984_v17 = vmax.f32 %v902_v7, 0.0 }
  0xe6   : > { %v985_v62 = vmax.f32 %v637_v56, 0.0  ;;  %v986_v2 = vmax.f32 %v726_v60, 0.0  ;;  %v2979_v56 = vld [vmem:[#allocation8 + $0x14] sm:$0xf0]  ;;  %1747 = vmatpush.bf16.msrb.mxu2 %v2804_v55 }
  0xe7   : > { %v3027_v60 = vld [vmem:[#allocation8 + $0x194] sm:$0xf0]  ;;  %v2676_v63 = vor.u32 %v2979_v56, %v2675_v53 }
  0xe8   : > { %v3514_v4 = vpack.c.bf16 %v985_v62, %v981_v61  ;;  %v3517_v6 = vpack.c.bf16 %v986_v2, %v982_v1  ;;  %v2868_v0 = vor.u32 %v3027_v60, %v2867_v57  ;;  %v2940_v60 = vld [vmem:[%s3479_s6 + $0x60] sm:$0xff] }
  0xe9   : > { %1569 = vmatpush.bf16.msrb.mxu0 %v2676_v63 }
  0xea   : > { %v814_v8 = vpop.f32.mrf.mxu2  ;;  %v903_v11 = vpop.f32.mrf.mxu3  ;;  %1836 = vmatpush.bf16.msrb.mxu3 %v2868_v0 }
  0xeb   : > { %v815_v10 = vadd.f32 %v814_v8, %v3509_v58  ;;  %v639_v12 = vpop.f32.mrf.mxu0  ;;  %v904_v13 = vadd.f32 %v903_v11, %v3511_v59  ;;  %v728_v14 = vpop.f32.mrf.mxu1  ;;  %v2739_v11 = vld [vmem:[#allocation8 + $0x90] sm:$0xf] }
  0xec   : > { %v640_v21 = vadd.f32 %v639_v12, %v3502_v40  ;;  %v729_v23 = vadd.f32 %v728_v14, %v3504_v41  ;;  %v2995_v12 = vld [vmem:[#allocation8 + $0x94] sm:$0xf0] }
  0xed   : > { %v987_v16 = vmax.f32 %v815_v10, 0.0  ;;  %v988_v18 = vmax.f32 %v904_v13, 0.0  ;;  %678 = vmatmul.bf16.gmra.mxu0 %v2937_v9 }
  0xee   : > { %767 = vmatmul.bf16.gmra.mxu1 %v2937_v9  ;;  %v989_v29 = vmax.f32 %v640_v21, 0.0  ;;  %v990_v31 = vmax.f32 %v729_v23, 0.0  ;;  %v2939_v23 = vld [vmem:[%s3479_s6 + $0x58] sm:$0xff] }
  0xef   : > { %v3523_v19 = vpack.c.bf16 %v987_v16, %v983_v15  ;;  %856 = vmatmul.bf16.gmra.mxu2 %v2937_v9  ;;  %v3525_v20 = vpack.c.bf16 %v988_v18, %v984_v17  ;;  %945 = vmatmul.bf16.gmra.mxu3 %v2937_v9  ;;  %v2740_v15 = vor.u32 %v2995_v12, %v2739_v11  ;;  %v2667_v11 = vld [vmem:[#allocation8] sm:$0xf] }
  0xf1   : > { %1658 = vmatpush.bf16.msrb.mxu1 %v2740_v15  ;;  %v2859_v15 = vld [vmem:[#allocation8 + $0x180] sm:$0xf] }
  0xf2   : > { %v817_v22 = vpop.f32.mrf.mxu2  ;;  %v906_v24 = vpop.f32.mrf.mxu3 }
  0xf3   : > { %v641_v25 = vpop.f32.mrf.mxu0  ;;  %v730_v27 = vpop.f32.mrf.mxu1  ;;  %v818_v34 = vadd.f32 %v817_v22, %v3509_v58  ;;  %v907_v36 = vadd.f32 %v906_v24, %v3511_v59 }
  0xf4   : > { %v642_v26 = vadd.f32 %v641_v25, %v3502_v40  ;;  %v731_v28 = vadd.f32 %v730_v27, %v3504_v41 }
  0xf5   : > { %v991_v46 = vmax.f32 %v818_v34, 0.0  ;;  %v992_v48 = vmax.f32 %v907_v36, 0.0 }
  0xf6   : > { %v993_v30 = vmax.f32 %v642_v26, 0.0  ;;  %v994_v32 = vmax.f32 %v731_v28, 0.0 }
  0xf8   : > { %v3531_v33 = vpack.c.bf16 %v993_v30, %v989_v29  ;;  %v3534_v35 = vpack.c.bf16 %v994_v32, %v990_v31 }
  0xfa   : > { %v819_v37 = vpop.f32.mrf.mxu2  ;;  %v908_v42 = vpop.f32.mrf.mxu3 }
  0xfb   : > { %v820_v39 = vadd.f32 %v819_v37, %v3509_v58  ;;  %v644_v43 = vpop.f32.mrf.mxu0  ;;  %v909_v44 = vadd.f32 %v908_v42, %v3511_v59  ;;  %v733_v45 = vpop.f32.mrf.mxu1 }
  0xfc   : > { %v645_v61 = vadd.f32 %v644_v43, %v3502_v40  ;;  %v734_v1 = vadd.f32 %v733_v45, %v3504_v41 }
  0xfd   : > { %v995_v47 = vmax.f32 %v820_v39, 0.0  ;;  %v996_v49 = vmax.f32 %v909_v44, 0.0  ;;  %683 = vmatmul.bf16.gmra.mxu0 %v2938_v38 }
  0xfe   : > { %772 = vmatmul.bf16.gmra.mxu1 %v2938_v38  ;;  %v997_v9 = vmax.f32 %v645_v61, 0.0  ;;  %v998_v13 = vmax.f32 %v734_v1, 0.0 }
  0xff   : > { %861 = vmatmul.bf16.gmra.mxu2 %v2938_v38  ;;  %v3540_v50 = vpack.c.bf16 %v995_v47, %v991_v46  ;;  %950 = vmatmul.bf16.gmra.mxu3 %v2938_v38  ;;  %v3542_v54 = vpack.c.bf16 %v996_v49, %v992_v48 }
 0x102   : > { %v822_v62 = vpop.f32.mrf.mxu2  ;;  %v911_v2 = vpop.f32.mrf.mxu3 }
 0x103   : > { %v646_v3 = vpop.f32.mrf.mxu0  ;;  %v735_v7 = vpop.f32.mrf.mxu1  ;;  %v823_v17 = vadd.f32 %v822_v62, %v3509_v58  ;;  %v912_v21 = vadd.f32 %v911_v2, %v3511_v59 }
 0x104   : > { %v647_v5 = vadd.f32 %v646_v3, %v3502_v40  ;;  %v736_v8 = vadd.f32 %v735_v7, %v3504_v41 }
 0x105   : > { %v999_v29 = vmax.f32 %v823_v17, 0.0  ;;  %v1000_v31 = vmax.f32 %v912_v21, 0.0  ;;  %v3025_v17 = vld [vmem:[#allocation8 + $0x184] sm:$0xf0] }
 0x106   : > { %v1001_v10 = vmax.f32 %v647_v5, 0.0  ;;  %v1002_v14 = vmax.f32 %v736_v8, 0.0 }
 0x108   : > { %v3548_v16 = vpack.c.bf16 %v1001_v10, %v997_v9  ;;  %v3551_v18 = vpack.c.bf16 %v1002_v14, %v998_v13  ;;  %v2795_v9 = vld [vmem:[#allocation8 + $0x100] sm:$0xf]  ;;  %v3009_v10 = vld [vmem:[#allocation8 + $0x104] sm:$0xf0] }
 0x109   : > { %v2796_v13 = vor.u32 %v3009_v10, %v2795_v9  ;;  %v2977_v14 = vld [vmem:[#allocation8 + $0x4] sm:$0xf0] }
 0x10a   : > { %v824_v22 = vpop.f32.mrf.mxu2  ;;  %v913_v25 = vpop.f32.mrf.mxu3 }
 0x10b   : > { %v825_v24 = vadd.f32 %v824_v22, %v3509_v58  ;;  %v649_v26 = vpop.f32.mrf.mxu0  ;;  %v914_v27 = vadd.f32 %v913_v25, %v3511_v59  ;;  %v738_v28 = vpop.f32.mrf.mxu1  ;;  %1748 = vmatpush.bf16.msrb.mxu2 %v2796_v13 }
 0x10c   : > { %v650_v37 = vadd.f32 %v649_v26, %v3502_v40  ;;  %v739_v39 = vadd.f32 %v738_v28, %v3504_v41 }
 0x10d   : > { %v1003_v30 = vmax.f32 %v825_v24, 0.0  ;;  %v1004_v32 = vmax.f32 %v914_v27, 0.0  ;;  %688 = vmatmul.bf16.gmra.mxu0 %v2939_v23  ;;  %v2860_v24 = vor.u32 %v3025_v17, %v2859_v15 }
 0x10e   : > { %777 = vmatmul.bf16.gmra.mxu1 %v2939_v23  ;;  %v1005_v47 = vmax.f32 %v650_v37, 0.0  ;;  %v1006_v49 = vmax.f32 %v739_v39, 0.0  ;;  %v2731_v37 = vld [vmem:[#allocation8 + $0x80] sm:$0xf] }
 0x10f   : > { %866 = vmatmul.bf16.gmra.mxu2 %v2939_v23  ;;  %v3557_v34 = vpack.c.bf16 %v1003_v30, %v999_v29  ;;  %955 = vmatmul.bf16.gmra.mxu3 %v2939_v23  ;;  %v3559_v36 = vpack.c.bf16 %v1004_v32, %v1000_v31  ;;  %v2668_v23 = vor.u32 %v2977_v14, %v2667_v11 }
 0x110   : > { %1837 = vmatpush.bf16.msrb.mxu3 %v2860_v24 }
 0x111   : > { %4112 = vst [vmem:[#allocation15_spill] sm:$0xff] %v3557_v34  ;;  %1570 = vmatpush.bf16.msrb.mxu0 %v2668_v23 }
 0x112   : > { %4113 = vst [vmem:[#allocation16_spill] sm:$0xff] %v3559_v36  ;;  %v827_v38 = vpop.f32.mrf.mxu2  ;;  %v916_v42 = vpop.f32.mrf.mxu3 }
 0x113   : > { %v651_v43 = vpop.f32.mrf.mxu0  ;;  %v740_v45 = vpop.f32.mrf.mxu1  ;;  %v828_v53 = vadd.f32 %v827_v38, %v3509_v58  ;;  %v917_v56 = vadd.f32 %v916_v42, %v3511_v59  ;;  %v2993_v38 = vld [vmem:[#allocation8 + $0x84] sm:$0xf0] }
 0x114   : > { %v652_v44 = vadd.f32 %v651_v43, %v3502_v40  ;;  %v741_v46 = vadd.f32 %v740_v45, %v3504_v41  ;;  %v2732_v43 = vor.u32 %v2993_v38, %v2731_v37 }
 0x115   : > { %v1007_v2 = vmax.f32 %v828_v53, 0.0  ;;  %v1008_v5 = vmax.f32 %v917_v56, 0.0 }
 0x116   : > { %v1009_v48 = vmax.f32 %v652_v44, 0.0  ;;  %v1010_v51 = vmax.f32 %v741_v46, 0.0  ;;  %1659 = vmatpush.bf16.msrb.mxu1 %v2732_v43 }
 0x118   : > { %v3565_v52 = vpack.c.bf16 %v1009_v48, %v1005_v47  ;;  %v3568_v55 = vpack.c.bf16 %v1010_v51, %v1006_v49  ;;  %v2941_v49 = vld [vmem:[%s3479_s6 + $0x68] sm:$0xff] }
 0x11a   : > { %4114 = vst [vmem:[#allocation17_spill] sm:$0xff] %v3565_v52  ;;  %v829_v57 = vpop.f32.mrf.mxu2  ;;  %v918_v62 = vpop.f32.mrf.mxu3 }
 0x11b   : > { %4115 = vst [vmem:[#allocation18_spill] sm:$0xff] %v3568_v55  ;;  %v830_v61 = vadd.f32 %v829_v57, %v3509_v58  ;;  %v654_v63 = vpop.f32.mrf.mxu0  ;;  %v919_v0 = vadd.f32 %v918_v62, %v3511_v59  ;;  %v743_v1 = vpop.f32.mrf.mxu1 }
 0x11c   : > { %v655_v21 = vadd.f32 %v654_v63, %v3502_v40  ;;  %v744_v25 = vadd.f32 %v743_v1, %v3504_v41 }
 0x11d   : > { %v1011_v3 = vmax.f32 %v830_v61, 0.0  ;;  %v1012_v7 = vmax.f32 %v919_v0, 0.0  ;;  %693 = vmatmul.bf16.gmra.mxu0 %v2940_v60 }
 0x11e   : > { %782 = vmatmul.bf16.gmra.mxu1 %v2940_v60  ;;  %v1013_v31 = vmax.f32 %v655_v21, 0.0  ;;  %v1014_v39 = vmax.f32 %v744_v25, 0.0 }
 0x11f   : > { %871 = vmatmul.bf16.gmra.mxu2 %v2940_v60  ;;  %v3574_v8 = vpack.c.bf16 %v1011_v3, %v1007_v2  ;;  %960 = vmatmul.bf16.gmra.mxu3 %v2940_v60  ;;  %v3576_v12 = vpack.c.bf16 %v1012_v7, %v1008_v5 }
 0x121   : > { %4116 = vst [vmem:[#allocation19_spill] sm:$0xff] %v3574_v8 }
 0x122   : > { %4117 = vst [vmem:[#allocation20_spill] sm:$0xff] %v3576_v12  ;;  %v832_v22 = vpop.f32.mrf.mxu2  ;;  %v921_v26 = vpop.f32.mrf.mxu3 }
 0x123   : > { %v656_v27 = vpop.f32.mrf.mxu0  ;;  %v745_v29 = vpop.f32.mrf.mxu1  ;;  %v833_v45 = vadd.f32 %v832_v22, %v3509_v58  ;;  %v922_v47 = vadd.f32 %v921_v26, %v3511_v59 }
 0x124   : > { %v657_v28 = vadd.f32 %v656_v27, %v3502_v40  ;;  %v746_v30 = vadd.f32 %v745_v29, %v3504_v41 }
 0x125   : > { %v1015_v61 = vmax.f32 %v833_v45, 0.0  ;;  %v1016_v63 = vmax.f32 %v922_v47, 0.0  ;;  %v3022_v47 = vld [vmem:[#allocation8 + $0x174] sm:$0xf] }
 0x126   : > { %v1017_v32 = vmax.f32 %v657_v28, 0.0  ;;  %v1018_v42 = vmax.f32 %v746_v30, 0.0  ;;  %v2942_v28 = vld [vmem:[%s3479_s6 + $0x70] sm:$0xff] }
 0x128   : > { %v3582_v44 = vpack.c.bf16 %v1017_v32, %v1013_v31  ;;  %v3585_v46 = vpack.c.bf16 %v1018_v42, %v1014_v39 }
 0x12a   : > { %4118 = vst [vmem:[#allocation21_spill] sm:$0xff] %v3582_v44  ;;  %v834_v48 = vpop.f32.mrf.mxu2  ;;  %v923_v53 = vpop.f32.mrf.mxu3 }
 0x12b   : > { %4119 = vst [vmem:[#allocation22_spill] sm:$0xff] %v3585_v46  ;;  %v835_v51 = vadd.f32 %v834_v48, %v3509_v58  ;;  %v659_v56 = vpop.f32.mrf.mxu0  ;;  %v924_v57 = vadd.f32 %v923_v53, %v3511_v59  ;;  %v748_v60 = vpop.f32.mrf.mxu1  ;;  %v2853_v48 = vld [vmem:[#allocation8 + $0x178] sm:$0xf0] }
 0x12c   : > { %v660_v3 = vadd.f32 %v659_v56, %v3502_v40  ;;  %v749_v7 = vadd.f32 %v748_v60, %v3504_v41  ;;  %v2856_v53 = vor.u32 %v3022_v47, %v2853_v48  ;;  %v2725_v56 = vld [vmem:[#allocation8 + $0x78] sm:$0xf0] }
 0x12d   : > { %v1019_v62 = vmax.f32 %v835_v51, 0.0  ;;  %v1020_v0 = vmax.f32 %v924_v57, 0.0  ;;  %698 = vmatmul.bf16.gmra.mxu0 %v2941_v49  ;;  %v3038_v57 = vld [vmem:[#allocation8 + $0x1f4] sm:$0xf]  ;;  %v2917_v60 = vld [vmem:[#allocation8 + $0x1f8] sm:$0xf0] }
 0x12e   : > { %787 = vmatmul.bf16.gmra.mxu1 %v2941_v49  ;;  %v1021_v15 = vmax.f32 %v660_v3, 0.0  ;;  %v1022_v21 = vmax.f32 %v749_v7, 0.0  ;;  %2097 = vmatpush.bf16.msra.mxu2 %v2856_v53 }
 0x12f   : > { %876 = vmatmul.bf16.gmra.mxu2 %v2941_v49  ;;  %v3591_v1 = vpack.c.bf16 %v1019_v62, %v1015_v61  ;;  %965 = vmatmul.bf16.gmra.mxu3 %v2941_v49  ;;  %v3593_v2 = vpack.c.bf16 %v1020_v0, %v1016_v63  ;;  %v2990_v49 = vld [vmem:[#allocation8 + $0x74] sm:$0xf]  ;;  %v2920_v0 = vor.u32 %v3038_v57, %v2917_v60 }
 0x130   : > { %v2728_v63 = vor.u32 %v2990_v49, %v2725_v56 }
 0x131   : > { %4120 = vst [vmem:[#allocation23_spill] sm:$0xff] %v3591_v1  ;;  %2186 = vmatpush.bf16.msra.mxu3 %v2920_v0 }
 0x132   : > { %4121 = vst [vmem:[#allocation24_spill] sm:$0xff] %v3593_v2  ;;  %v837_v5 = vpop.f32.mrf.mxu2  ;;  %v926_v9 = vpop.f32.mrf.mxu3  ;;  %1919 = vmatpush.bf16.msra.mxu0 %v2728_v63 }
 0x133   : > { %v661_v10 = vpop.f32.mrf.mxu0  ;;  %v750_v13 = vpop.f32.mrf.mxu1  ;;  %v838_v24 = vadd.f32 %v837_v5, %v3509_v58  ;;  %v927_v26 = vadd.f32 %v926_v9, %v3511_v59 }
 0x134   : > { %v662_v11 = vadd.f32 %v661_v10, %v3502_v40  ;;  %v751_v14 = vadd.f32 %v750_v13, %v3504_v41 }
 0x135   : > { %v1023_v38 = vmax.f32 %v838_v24, 0.0  ;;  %v1024_v42 = vmax.f32 %v927_v26, 0.0 }
 0x136   : > { %v1025_v17 = vmax.f32 %v662_v11, 0.0  ;;  %v1026_v22 = vmax.f32 %v751_v14, 0.0 }
 0x138   : > { %v3599_v23 = vpack.c.bf16 %v1025_v17, %v1021_v15  ;;  %v3602_v25 = vpack.c.bf16 %v1026_v22, %v1022_v21  ;;  %v3006_v15 = vld [vmem:[#allocation8 + $0xf4] sm:$0xf]  ;;  %v2789_v17 = vld [vmem:[#allocation8 + $0xf8] sm:$0xf0] }
 0x139   : > { %v2792_v24 = vor.u32 %v3006_v15, %v2789_v17 }
 0x13a   : > { %4122 = vst [vmem:[#allocation25_spill] sm:$0xff] %v3599_v23  ;;  %v839_v27 = vpop.f32.mrf.mxu2  ;;  %v928_v30 = vpop.f32.mrf.mxu3 }
 0x13b   : > { %4123 = vst [vmem:[#allocation26_spill] sm:$0xff] %v3602_v25  ;;  %v840_v29 = vadd.f32 %v839_v27, %v3509_v58  ;;  %v664_v31 = vpop.f32.mrf.mxu0  ;;  %v929_v32 = vadd.f32 %v928_v30, %v3511_v59  ;;  %v753_v37 = vpop.f32.mrf.mxu1  ;;  %2008 = vmatpush.bf16.msra.mxu1 %v2792_v24 }
 0x13c   : > { %v665_v61 = vadd.f32 %v664_v31, %v3502_v40  ;;  %v754_v3 = vadd.f32 %v753_v37, %v3504_v41  ;;  %v2943_v31 = vld [vmem:[%s3479_s6 + $0x78] sm:$0xff]  ;;  %s3267_s6 = scalar_lea.hbm %s4082_s5, 1024 }
 0x13d   : > { %v1027_v39 = vmax.f32 %v840_v29, 0.0  ;;  %v1028_v43 = vmax.f32 %v929_v32, 0.0  ;;  %703 = vmatmul.bf16.gmra.mxu0 %v2942_v28  ;;  %p3269_p9 = scmp.lt.s32.totalorder %s3267_s6, %s3263_s15 }
 0x13e   : > { %792 = vmatmul.bf16.gmra.mxu1 %v2942_v28  ;;  %v1029_v13 = vmax.f32 %v665_v61, 0.0  ;;  %v1030_v21 = vmax.f32 %v754_v3, 0.0 }
 0x13f   : > { %881 = vmatmul.bf16.gmra.mxu2 %v2942_v28  ;;  %v3608_v45 = vpack.c.bf16 %v1027_v39, %v1023_v38  ;;  %970 = vmatmul.bf16.gmra.mxu3 %v2942_v28  ;;  %v3610_v51 = vpack.c.bf16 %v1028_v43, %v1024_v42  ;;  %p3270_p2 = por %p3269_p9, %p3268_p11 }
 0x141   : > { %4124 = vst [vmem:[#allocation27_spill] sm:$0xff] %v3608_v45  ;;  %p3271_p10 = pnand %p3270_p2, %p3266_p8 }
 0x142   : > { %4125 = vst [vmem:[#allocation28_spill] sm:$0xff] %v3610_v51  ;;  %v842_v62 = vpop.f32.mrf.mxu2  ;;  %v931_v5 = vpop.f32.mrf.mxu3 }
 0x143   : > { %v666_v7 = vpop.f32.mrf.mxu0  ;;  %v755_v10 = vpop.f32.mrf.mxu1  ;;  %v843_v27 = vadd.f32 %v842_v62, %v3509_v58  ;;  %v932_v29 = vadd.f32 %v931_v5, %v3511_v59 }
 0x144   : > { %v667_v9 = vadd.f32 %v666_v7, %v3502_v40  ;;  %v756_v11 = vadd.f32 %v755_v10, %v3504_v41 }
 0x145   : > { %v1031_v43 = vmax.f32 %v843_v27, 0.0  ;;  %v1032_v48 = vmax.f32 %v932_v29, 0.0 }
 0x146   : > { %v1033_v14 = vmax.f32 %v667_v9, 0.0  ;;  %v1034_v22 = vmax.f32 %v756_v11, 0.0 }
 0x148   : > { %v3616_v26 = vpack.c.bf16 %v1033_v14, %v1029_v13  ;;  %v3619_v28 = vpack.c.bf16 %v1034_v22, %v1030_v21 }
 0x14a   : > { %4126 = vst [vmem:[#allocation29_spill] sm:$0xff] %v3616_v26  ;;  %v844_v30 = vpop.f32.mrf.mxu2  ;;  %v933_v37 = vpop.f32.mrf.mxu3 }
 0x14b   : > { %4127 = vst [vmem:[#allocation30_spill] sm:$0xff] %v3619_v28  ;;  %v845_v32 = vadd.f32 %v844_v30, %v3509_v58  ;;  %v669_v38 = vpop.f32.mrf.mxu0  ;;  %v934_v39 = vadd.f32 %v933_v37, %v3511_v59  ;;  %v758_v42 = vpop.f32.mrf.mxu1 }
 0x14c   : > { %v670_v57 = vadd.f32 %v669_v38, %v3502_v40  ;;  %v759_v61 = vadd.f32 %v758_v42, %v3504_v41  ;;  %v3020_v42 = vld [vmem:[#allocation8 + $0x164] sm:$0xf] }
 0x14d   : > { %v1035_v47 = vmax.f32 %v845_v32, 0.0  ;;  %v1036_v49 = vmax.f32 %v934_v39, 0.0  ;;  %708 = vmatmul.bf16.gmra.mxu0 %v2943_v31 }
 0x14e   : > { %797 = vmatmul.bf16.gmra.mxu1 %v2943_v31  ;;  %v1037_v7 = vmax.f32 %v670_v57, 0.0  ;;  %v1038_v10 = vmax.f32 %v759_v61, 0.0  ;;  %v2717_v57 = vld [vmem:[#allocation8 + $0x68] sm:$0xf0] }
 0x14f   : > { %886 = vmatmul.bf16.gmra.mxu2 %v2943_v31  ;;  %v3625_v53 = vpack.c.bf16 %v1035_v47, %v1031_v43  ;;  %975 = vmatmul.bf16.gmra.mxu3 %v2943_v31  ;;  %v3627_v56 = vpack.c.bf16 %v1036_v49, %v1032_v48  ;;  %v2845_v43 = vld [vmem:[#allocation8 + $0x168] sm:$0xf0]  ;;  %v2988_v47 = vld [vmem:[#allocation8 + $0x64] sm:$0xf] }
 0x150   : > { %v2848_v49 = vor.u32 %v3020_v42, %v2845_v43  ;;  %v2909_v61 = vld [vmem:[#allocation8 + $0x1e8] sm:$0xf0] }
 0x151   : > { %4128 = vst [vmem:[#allocation31_spill] sm:$0xff] %v3625_v53 }
 0x152   : > { %4129 = vst [vmem:[#allocation32_spill] sm:$0xff] %v3627_v56  ;;  %v847_v60 = vpop.f32.mrf.mxu2  ;;  %v936_v62 = vpop.f32.mrf.mxu3  ;;  %2098 = vmatpush.bf16.msra.mxu2 %v2848_v49 }
 0x153   : > { %v671_v63 = vpop.f32.mrf.mxu0  ;;  %v760_v3 = vpop.f32.mrf.mxu1  ;;  %v848_v14 = vadd.f32 %v847_v60, %v3509_v58  ;;  %v937_v17 = vadd.f32 %v936_v62, %v3511_v59  ;;  %v3036_v60 = vld [vmem:[#allocation8 + $0x1e4] sm:$0xf] }
 0x154   : > { %v672_v0 = vadd.f32 %v671_v63, %v3502_v40  ;;  %v761_v5 = vadd.f32 %v760_v3, %v3504_v41  ;;  %v2912_v3 = vor.u32 %v3036_v60, %v2909_v61 }
 0x155   : > { %v1039_v31 = vmax.f32 %v848_v14, 0.0  ;;  %v1040_v37 = vmax.f32 %v937_v17, 0.0 }
 0x156   : > { %v1041_v9 = vmax.f32 %v672_v0, 0.0  ;;  %v1042_v11 = vmax.f32 %v761_v5, 0.0  ;;  %v2720_v0 = vor.u32 %v2988_v47, %v2717_v57  ;;  %2187 = vmatpush.bf16.msra.mxu3 %v2912_v3 }
 0x158   : > { %v3633_v13 = vpack.c.bf16 %v1041_v9, %v1037_v7  ;;  %v3636_v15 = vpack.c.bf16 %v1042_v11, %v1038_v10  ;;  %1920 = vmatpush.bf16.msra.mxu0 %v2720_v0 }
 0x15a   : > { %v849_v21 = vpop.f32.mrf.mxu2  ;;  %v938_v24 = vpop.f32.mrf.mxu3 }
 0x15b   : > { %v850_v22 = vadd.f32 %v849_v21, %v3509_v58  ;;  %v674_v27 = vpop.f32.mrf.mxu0  ;;  %v939_v29 = vadd.f32 %v938_v24, %v3511_v59  ;;  %v763_v30 = vpop.f32.mrf.mxu1  ;;  %v2781_v24 = vld [vmem:[#allocation8 + $0xe8] sm:$0xf0] }
 0x15c   : > { %v675_v62 = vadd.f32 %v674_v27, %v3502_v40  ;;  %v764_v5 = vadd.f32 %v763_v30, %v3504_v41 }
 0x15d   : > { %v1043_v32 = vmax.f32 %v850_v22, 0.0  ;;  %v1044_v38 = vmax.f32 %v939_v29, 0.0  ;;  %1571 = vmatmul.bf16.vlgmr.msrb.gmra.mxu0 %v3514_v4  ;;  %v3004_v22 = vld [vmem:[#allocation8 + $0xe4] sm:$0xf] }
 0x15e   : > { %1660 = vmatmul.bf16.vlgmr.msrb.gmra.mxu1 %v3517_v6  ;;  %v1045_v17 = vmax.f32 %v675_v62, 0.0  ;;  %v1046_v27 = vmax.f32 %v764_v5, 0.0 }
 0x15f   : > { %1749 = vmatmul.bf16.vlgmr.msrb.gmra.mxu2 %v3523_v19  ;;  %v3644_v39 = vpack.c.bf16 %v1043_v32, %v1039_v31  ;;  %1838 = vmatmul.bf16.vlgmr.msrb.gmra.mxu3 %v3525_v20  ;;  %v3647_v48 = vpack.c.bf16 %v1044_v38, %v1040_v37  ;;  %v2784_v31 = vor.u32 %v3004_v22, %v2781_v24 }
 0x161   : > { %2009 = vmatpush.bf16.msra.mxu1 %v2784_v31 }
 0x162   : > { %v852_v63 = vpop.f32.mrf.mxu2  ;;  %v941_v7 = vpop.f32.mrf.mxu3 }
 0x163   : > { %v676_v9 = vpop.f32.mrf.mxu0  ;;  %v765_v11 = vpop.f32.mrf.mxu1  ;;  %v853_v30 = vadd.f32 %v852_v63, %v3509_v58  ;;  %v942_v38 = vadd.f32 %v941_v7, %v3511_v59 }
 0x164   : > { %v677_v10 = vadd.f32 %v676_v9, %v3502_v40  ;;  %v766_v14 = vadd.f32 %v765_v11, %v3504_v41 }
 0x165   : > { %v1047_v61 = vmax.f32 %v853_v30, 0.0  ;;  %v1048_v0 = vmax.f32 %v942_v38, 0.0 }
 0x166   : > { %v1049_v21 = vmax.f32 %v677_v10, 0.0  ;;  %v1050_v29 = vmax.f32 %v766_v14, 0.0 }
 0x168   : > { %v3653_v32 = vpack.c.bf16 %v1049_v21, %v1045_v17  ;;  %v3656_v37 = vpack.c.bf16 %v1050_v29, %v1046_v27 }
 0x16a   : > { %4130 = vst [vmem:[#allocation33_spill] sm:$0xff] %v3653_v32  ;;  %v854_v42 = vpop.f32.mrf.mxu2  ;;  %v943_v47 = vpop.f32.mrf.mxu3 }
 0x16b   : > { %4131 = vst [vmem:[#allocation34_spill] sm:$0xff] %v3656_v37  ;;  %v855_v43 = vadd.f32 %v854_v42, %v3509_v58  ;;  %v679_v49 = vpop.f32.mrf.mxu0  ;;  %v944_v57 = vadd.f32 %v943_v47, %v3511_v59  ;;  %v768_v60 = vpop.f32.mrf.mxu1 }
 0x16c   : > { %v680_v7 = vadd.f32 %v679_v49, %v3502_v40  ;;  %v769_v10 = vadd.f32 %v768_v60, %v3504_v41 }
 0x16d   : > { %v1051_v62 = vmax.f32 %v855_v43, 0.0  ;;  %v1052_v3 = vmax.f32 %v944_v57, 0.0  ;;  %1576 = vmatmul.bf16.gmra.mxu0 %v3531_v33 }
 0x16e   : > { %1665 = vmatmul.bf16.gmra.mxu1 %v3534_v35  ;;  %v1053_v24 = vmax.f32 %v680_v7, 0.0  ;;  %v1054_v29 = vmax.f32 %v769_v10, 0.0 }
 0x16f   : > { %1754 = vmatmul.bf16.gmra.mxu2 %v3540_v50  ;;  %v3664_v63 = vpack.c.bf16 %v1051_v62, %v1047_v61  ;;  %1843 = vmatmul.bf16.gmra.mxu3 %v3542_v54  ;;  %v3667_v5 = vpack.c.bf16 %v1052_v3, %v1048_v0 }
 0x171   : > { %4132 = vst [vmem:[#allocation35_spill] sm:$0xff] %v3664_v63 }
 0x172   : > { %4133 = vst [vmem:[#allocation36_spill] sm:$0xff] %v3667_v5  ;;  %v857_v9 = vpop.f32.mrf.mxu2  ;;  %v946_v11 = vpop.f32.mrf.mxu3 }
 0x173   : > { %v681_v14 = vpop.f32.mrf.mxu0  ;;  %v770_v21 = vpop.f32.mrf.mxu1  ;;  %v858_v38 = vadd.f32 %v857_v9, %v3509_v58  ;;  %v947_v43 = vadd.f32 %v946_v11, %v3511_v59  ;;  %v3018_v11 = vld [vmem:[#allocation8 + $0x154] sm:$0xf] }
 0x174   : > { %v682_v17 = vadd.f32 %v681_v14, %v3502_v40  ;;  %v771_v22 = vadd.f32 %v770_v21, %v3504_v41  ;;  %v2837_v14 = vld [vmem:[#allocation8 + $0x158] sm:$0xf0] }
 0x175   : > { %v1055_v0 = vmax.f32 %v858_v38, 0.0  ;;  %v1056_v7 = vmax.f32 %v947_v43, 0.0 }
 0x176   : > { %v1057_v27 = vmax.f32 %v682_v17, 0.0  ;;  %v1058_v31 = vmax.f32 %v771_v22, 0.0  ;;  %v2986_v17 = vld [vmem:[#allocation8 + $0x54] sm:$0xf]  ;;  %v2840_v22 = vor.u32 %v3018_v11, %v2837_v14 }
 0x177   : > { %v3002_v14 = vld [vmem:[#allocation8 + $0xd4] sm:$0xf] }
 0x178   : > { %v3673_v30 = vpack.c.bf16 %v1057_v27, %v1053_v24  ;;  %v3676_v42 = vpack.c.bf16 %v1058_v31, %v1054_v29  ;;  %v2709_v24 = vld [vmem:[#allocation8 + $0x58] sm:$0xf0]  ;;  %v3034_v27 = vld [vmem:[#allocation8 + $0x1d4] sm:$0xf]  ;;  %2099 = vmatpush.bf16.msra.mxu2 %v2840_v22 }
 0x179   : > { %v2901_v29 = vld [vmem:[#allocation8 + $0x1d8] sm:$0xf0]  ;;  %v2712_v43 = vor.u32 %v2986_v17, %v2709_v24 }
 0x17a   : > { %v859_v47 = vpop.f32.mrf.mxu2  ;;  %v948_v57 = vpop.f32.mrf.mxu3 }
 0x17b   : > { %v860_v49 = vadd.f32 %v859_v47, %v3509_v58  ;;  %v684_v60 = vpop.f32.mrf.mxu0  ;;  %v949_v61 = vadd.f32 %v948_v57, %v3511_v59  ;;  %v773_v62 = vpop.f32.mrf.mxu1  ;;  %v2904_v47 = vor.u32 %v3034_v27, %v2901_v29  ;;  %1921 = vmatpush.bf16.msra.mxu0 %v2712_v43 }
 0x17c   : > { %v685_v31 = vadd.f32 %v684_v60, %v3502_v40 }
 0x17d   : > { %v1059_v3 = vmax.f32 %v860_v49, 0.0  ;;  %v1060_v10 = vmax.f32 %v949_v61, 0.0  ;;  %1581 = vmatmul.bf16.gmra.mxu0 %v3548_v16  ;;  %v774_v49 = vadd.f32 %v773_v62, %v3504_v41  ;;  %2188 = vmatpush.bf16.msra.mxu3 %v2904_v47 }
 0x17e   : > { %1670 = vmatmul.bf16.gmra.mxu1 %v3551_v18 }
 0x17f   : > { %1759 = vmatmul.bf16.gmra.mxu2 %v3557_v34  ;;  %v3684_v9 = vpack.c.bf16 %v1059_v3, %v1055_v0  ;;  %1848 = vmatmul.bf16.gmra.mxu3 %v3559_v36  ;;  %v3687_v21 = vpack.c.bf16 %v1060_v10, %v1056_v7  ;;  %v1061_v10 = vmax.f32 %v685_v31, 0.0  ;;  %v2773_v36 = vld [vmem:[#allocation8 + $0xd8] sm:$0xf0]  ;;  %v1062_v60 = vmax.f32 %v774_v49, 0.0 }
 0x180   : > { %v2776_v17 = vor.u32 %v3002_v14, %v2773_v36 }
 0x182   : > { %v862_v38 = vpop.f32.mrf.mxu2  ;;  %v951_v57 = vpop.f32.mrf.mxu3  ;;  %2010 = vmatpush.bf16.msra.mxu1 %v2776_v17 }
 0x183   : > { %v686_v61 = vpop.f32.mrf.mxu0  ;;  %v775_v3 = vpop.f32.mrf.mxu1  ;;  %v863_v62 = vadd.f32 %v862_v38, %v3509_v58  ;;  %v952_v27 = vadd.f32 %v951_v57, %v3511_v59 }
 0x184   : > { %v687_v0 = vadd.f32 %v686_v61, %v3502_v40  ;;  %v776_v7 = vadd.f32 %v775_v3, %v3504_v41 }
 0x185   : > { %v1063_v49 = vmax.f32 %v863_v62, 0.0  ;;  %v1064_v36 = vmax.f32 %v952_v27, 0.0 }
 0x186   : > { %v1065_v11 = vmax.f32 %v687_v0, 0.0  ;;  %v1066_v34 = vmax.f32 %v776_v7, 0.0 }
 0x188   : > { %v3693_v24 = vpack.c.bf16 %v1065_v11, %v1061_v10  ;;  %v3696_v22 = vpack.c.bf16 %v1066_v34, %v1062_v60 }
 0x18a   : > { %v864_v29 = vpop.f32.mrf.mxu2  ;;  %v953_v47 = vpop.f32.mrf.mxu3 }
 0x18b   : > { %v865_v43 = vadd.f32 %v864_v29, %v3509_v58  ;;  %v689_v31 = vpop.f32.mrf.mxu0  ;;  %v954_v61 = vadd.f32 %v953_v47, %v3511_v59  ;;  %v778_v0 = vpop.f32.mrf.mxu1 }
 0x18c   : > { %v690_v57 = vadd.f32 %v689_v31, %v3502_v40  ;;  %v779_v11 = vadd.f32 %v778_v0, %v3504_v41 }
 0x18d   : > { %v1067_v3 = vmax.f32 %v865_v43, 0.0  ;;  %v1068_v7 = vmax.f32 %v954_v61, 0.0  ;;  %1586 = vmatmul.bf16.gmra.mxu0 %v3565_v52 }
 0x18e   : > { %1675 = vmatmul.bf16.gmra.mxu1 %v3568_v55  ;;  %v1069_v29 = vmax.f32 %v690_v57, 0.0  ;;  %v1070_v47 = vmax.f32 %v779_v11, 0.0  ;;  %v2765_v55 = vld [vmem:[#allocation8 + $0xc8] sm:$0xf0] }
 0x18f   : > { %1764 = vmatmul.bf16.gmra.mxu2 %v3574_v8  ;;  %v3704_v34 = vpack.c.bf16 %v1067_v3, %v1063_v49  ;;  %1853 = vmatmul.bf16.gmra.mxu3 %v3576_v12  ;;  %v3707_v38 = vpack.c.bf16 %v1068_v7, %v1064_v36 }
 0x192   : > { %v867_v10 = vpop.f32.mrf.mxu2  ;;  %v956_v14 = vpop.f32.mrf.mxu3 }
 0x193   : > { %v691_v60 = vpop.f32.mrf.mxu0  ;;  %v780_v62 = vpop.f32.mrf.mxu1  ;;  %v868_v3 = vadd.f32 %v867_v10, %v3509_v58  ;;  %v957_v31 = vadd.f32 %v956_v14, %v3511_v59  ;;  %v3016_v14 = vld [vmem:[#allocation8 + $0x144] sm:$0xf] }
 0x194   : > { %v692_v17 = vadd.f32 %v691_v60, %v3502_v40  ;;  %v781_v27 = vadd.f32 %v780_v62, %v3504_v41 }
 0x195   : > { %v1071_v57 = vmax.f32 %v868_v3, 0.0  ;;  %v1072_v11 = vmax.f32 %v957_v31, 0.0  ;;  %v3032_v3 = vld [vmem:[#allocation8 + $0x1c4] sm:$0xf]  ;;  %v2893_v31 = vld [vmem:[#allocation8 + $0x1c8] sm:$0xf0] }
 0x196   : > { %v1073_v43 = vmax.f32 %v692_v17, 0.0  ;;  %v1074_v61 = vmax.f32 %v781_v27, 0.0 }
 0x198   : > { %v3713_v49 = vpack.c.bf16 %v1073_v43, %v1069_v29  ;;  %v3716_v36 = vpack.c.bf16 %v1074_v61, %v1070_v47  ;;  %v2829_v29 = vld [vmem:[#allocation8 + $0x148] sm:$0xf0]  ;;  %v2984_v43 = vld [vmem:[#allocation8 + $0x44] sm:$0xf] }
 0x199   : > { %v2701_v61 = vld [vmem:[#allocation8 + $0x48] sm:$0xf0] }
 0x19a   : > { %v869_v0 = vpop.f32.mrf.mxu2  ;;  %v958_v12 = vpop.f32.mrf.mxu3 }
 0x19b   : > { %v870_v7 = vadd.f32 %v869_v0, %v3509_v58  ;;  %v694_v60 = vpop.f32.mrf.mxu0  ;;  %v959_v8 = vadd.f32 %v958_v12, %v3511_v59  ;;  %v783_v62 = vpop.f32.mrf.mxu1  ;;  %v2832_v12 = vor.u32 %v3016_v14, %v2829_v29  ;;  %v3000_v29 = vld [vmem:[#allocation8 + $0xc4] sm:$0xf] }
 0x19d   : > { %v1075_v17 = vmax.f32 %v870_v7, 0.0  ;;  %v1076_v27 = vmax.f32 %v959_v8, 0.0  ;;  %1591 = vmatmul.bf16.gmra.mxu0 %v3582_v44  ;;  %v695_v8 = vadd.f32 %v694_v60, %v3502_v40  ;;  %v2704_v7 = vor.u32 %v2984_v43, %v2701_v61  ;;  %2100 = vmatpush.bf16.msra.mxu2 %v2832_v12 }
 0x19e   : > { %1680 = vmatmul.bf16.gmra.mxu1 %v3585_v46  ;;  %v2896_v46 = vor.u32 %v3032_v3, %v2893_v31  ;;  %v2768_v43 = vor.u32 %v3000_v29, %v2765_v55 }
 0x19f   : > { %1769 = vmatmul.bf16.gmra.mxu2 %v3591_v1  ;;  %v3724_v10 = vpack.c.bf16 %v1075_v17, %v1071_v57  ;;  %1858 = vmatmul.bf16.gmra.mxu3 %v3593_v2  ;;  %v3727_v47 = vpack.c.bf16 %v1076_v27, %v1072_v11  ;;  %v784_v1 = vadd.f32 %v783_v62, %v3504_v41  ;;  %v1077_v27 = vmax.f32 %v695_v8, 0.0 }
 0x1a0   : > { %1922 = vmatpush.bf16.msra.mxu0 %v2704_v7  ;;  %2189 = vmatpush.bf16.msra.mxu3 %v2896_v46 }
 0x1a1   : > { %v1078_v60 = vmax.f32 %v784_v1, 0.0  ;;  %2011 = vmatpush.bf16.msra.mxu1 %v2768_v43 }
 0x1a2   : > { %v872_v0 = vpop.f32.mrf.mxu2  ;;  %v961_v57 = vpop.f32.mrf.mxu3 }
 0x1a3   : > { %v696_v17 = vpop.f32.mrf.mxu0  ;;  %v785_v44 = vpop.f32.mrf.mxu1  ;;  %v873_v62 = vadd.f32 %v872_v0, %v3509_v58  ;;  %v962_v3 = vadd.f32 %v961_v57, %v3511_v59 }
 0x1a4   : > { %v697_v2 = vadd.f32 %v696_v17, %v3502_v40  ;;  %v786_v11 = vadd.f32 %v785_v44, %v3504_v41 }
 0x1a5   : > { %v1079_v1 = vmax.f32 %v873_v62, 0.0  ;;  %v1080_v55 = vmax.f32 %v962_v3, 0.0 }
 0x1a6   : > { %v1081_v14 = vmax.f32 %v697_v2, 0.0  ;;  %v1082_v52 = vmax.f32 %v786_v11, 0.0 }
 0x1a8   : > { %v3733_v61 = vpack.c.bf16 %v1081_v14, %v1077_v27  ;;  %v3736_v12 = vpack.c.bf16 %v1082_v52, %v1078_v60 }
 0x1aa   : > { %v874_v31 = vpop.f32.mrf.mxu2  ;;  %v963_v44 = vpop.f32.mrf.mxu3 }
 0x1ab   : > { %v875_v46 = vadd.f32 %v874_v31, %v3509_v58  ;;  %v699_v8 = vpop.f32.mrf.mxu0  ;;  %v964_v2 = vadd.f32 %v963_v44, %v3511_v59  ;;  %v788_v7 = vpop.f32.mrf.mxu1 }
 0x1ac   : > { %v700_v57 = vadd.f32 %v699_v8, %v3502_v40  ;;  %v789_v14 = vadd.f32 %v788_v7, %v3504_v41 }
 0x1ad   : > { %v1083_v17 = vmax.f32 %v875_v46, 0.0  ;;  %v1084_v11 = vmax.f32 %v964_v2, 0.0  ;;  %1596 = vmatmul.bf16.gmra.mxu0 %v3599_v23  ;;  %v2757_v23 = vld [vmem:[#allocation8 + $0xb8] sm:$0xf0] }
 0x1ae   : > { %1685 = vmatmul.bf16.gmra.mxu1 %v3602_v25  ;;  %v1085_v31 = vmax.f32 %v700_v57, 0.0  ;;  %v1086_v44 = vmax.f32 %v789_v14, 0.0 }
 0x1af   : > { %1774 = vmatmul.bf16.gmra.mxu2 %v3608_v45  ;;  %v3744_v52 = vpack.c.bf16 %v1083_v17, %v1079_v1  ;;  %1863 = vmatmul.bf16.gmra.mxu3 %v3610_v51  ;;  %v3747_v0 = vpack.c.bf16 %v1084_v11, %v1080_v55 }
 0x1b2   : > { %v877_v27 = vpop.f32.mrf.mxu2  ;;  %v966_v29 = vpop.f32.mrf.mxu3 }
 0x1b3   : > { %v701_v60 = vpop.f32.mrf.mxu0  ;;  %v790_v62 = vpop.f32.mrf.mxu1  ;;  %v878_v17 = vadd.f32 %v877_v27, %v3509_v58  ;;  %v967_v8 = vadd.f32 %v966_v29, %v3511_v59  ;;  %v3014_v29 = vld [vmem:[#allocation8 + $0x134] sm:$0xf] }
 0x1b4   : > { %v702_v43 = vadd.f32 %v701_v60, %v3502_v40  ;;  %v791_v3 = vadd.f32 %v790_v62, %v3504_v41 }
 0x1b5   : > { %v1087_v57 = vmax.f32 %v878_v17, 0.0  ;;  %v1088_v14 = vmax.f32 %v967_v8, 0.0  ;;  %v3030_v17 = vld [vmem:[#allocation8 + $0x1b4] sm:$0xf]  ;;  %v2885_v8 = vld [vmem:[#allocation8 + $0x1b8] sm:$0xf0] }
 0x1b6   : > { %v1089_v46 = vmax.f32 %v702_v43, 0.0  ;;  %v1090_v2 = vmax.f32 %v791_v3, 0.0 }
 0x1b8   : > { %v3753_v1 = vpack.c.bf16 %v1089_v46, %v1085_v31  ;;  %v3756_v55 = vpack.c.bf16 %v1090_v2, %v1086_v44  ;;  %v2821_v31 = vld [vmem:[#allocation8 + $0x138] sm:$0xf0]  ;;  %v2982_v46 = vld [vmem:[#allocation8 + $0x34] sm:$0xf] }
 0x1b9   : > { %v2693_v2 = vld [vmem:[#allocation8 + $0x38] sm:$0xf0] }
 0x1ba   : > { %v879_v7 = vpop.f32.mrf.mxu2  ;;  %v968_v51 = vpop.f32.mrf.mxu3 }
 0x1bb   : > { %v880_v11 = vadd.f32 %v879_v7, %v3509_v58  ;;  %v704_v60 = vpop.f32.mrf.mxu0  ;;  %v969_v45 = vadd.f32 %v968_v51, %v3511_v59  ;;  %v793_v62 = vpop.f32.mrf.mxu1  ;;  %v2824_v51 = vor.u32 %v3014_v29, %v2821_v31 }
 0x1bd   : > { %v1091_v43 = vmax.f32 %v880_v11, 0.0  ;;  %v1092_v3 = vmax.f32 %v969_v45, 0.0  ;;  %1601 = vmatmul.bf16.gmra.mxu0 %v3616_v26  ;;  %v705_v45 = vadd.f32 %v704_v60, %v3502_v40  ;;  %v2696_v11 = vor.u32 %v2982_v46, %v2693_v2  ;;  %2101 = vmatpush.bf16.msra.mxu2 %v2824_v51  ;;  %v2998_v60 = vld [vmem:[#allocation8 + $0xb4] sm:$0xf] }
 0x1be   : > { %1690 = vmatmul.bf16.gmra.mxu1 %v3619_v28  ;;  %v2888_v28 = vor.u32 %v3030_v17, %v2885_v8  ;;  %v2760_v46 = vor.u32 %v2998_v60, %v2757_v23 }
 0x1bf   : > { %1779 = vmatmul.bf16.gmra.mxu2 %v3625_v53  ;;  %v3764_v27 = vpack.c.bf16 %v1091_v43, %v1087_v57  ;;  %1868 = vmatmul.bf16.gmra.mxu3 %v3627_v56  ;;  %v3767_v44 = vpack.c.bf16 %v1092_v3, %v1088_v14  ;;  %v794_v53 = vadd.f32 %v793_v62, %v3504_v41  ;;  %v1093_v3 = vmax.f32 %v705_v45, 0.0 }
 0x1c0   : > { %1923 = vmatpush.bf16.msra.mxu0 %v2696_v11  ;;  %2190 = vmatpush.bf16.msra.mxu3 %v2888_v28 }
 0x1c1   : > { %v1094_v31 = vmax.f32 %v794_v53, 0.0  ;;  %2012 = vmatpush.bf16.msra.mxu1 %v2760_v46 }
 0x1c2   : > { %v882_v7 = vpop.f32.mrf.mxu2  ;;  %v971_v57 = vpop.f32.mrf.mxu3 }
 0x1c3   : > { %v706_v43 = vpop.f32.mrf.mxu0  ;;  %v795_v26 = vpop.f32.mrf.mxu1  ;;  %v883_v62 = vadd.f32 %v882_v7, %v3509_v58  ;;  %v972_v51 = vadd.f32 %v971_v57, %v3511_v59 }
 0x1c4   : > { %v707_v56 = vadd.f32 %v706_v43, %v3502_v40  ;;  %v796_v14 = vadd.f32 %v795_v26, %v3504_v41 }
 0x1c5   : > { %v1095_v11 = vmax.f32 %v883_v62, 0.0  ;;  %v1096_v23 = vmax.f32 %v972_v51, 0.0 }
 0x1c6   : > { %v1097_v29 = vmax.f32 %v707_v56, 0.0  ;;  %v1098_v25 = vmax.f32 %v796_v14, 0.0 }
 0x1c8   : > { %v3773_v2 = vpack.c.bf16 %v1097_v29, %v1093_v3  ;;  %v3776_v17 = vpack.c.bf16 %v1098_v25, %v1094_v31 }
 0x1ca   : > { %v884_v8 = vpop.f32.mrf.mxu2  ;;  %v973_v26 = vpop.f32.mrf.mxu3 }
 0x1cb   : > { %v885_v28 = vadd.f32 %v884_v8, %v3509_v58  ;;  %v709_v45 = vpop.f32.mrf.mxu0  ;;  %v974_v53 = vadd.f32 %v973_v26, %v3511_v59  ;;  %v798_v56 = vpop.f32.mrf.mxu1  ;;  %v3796_v26 = vld [vmem:[%s4081_s4] sm:$0x3] }
 0x1cc   : > { %v710_v57 = vadd.f32 %v709_v45, %v3502_v40  ;;  %v799_v29 = vadd.f32 %v798_v56, %v3504_v41  ;;  %4134 = vst [vmem:[#allocation37_spill] sm:$0xff] %v3796_v26 }
 0x1cd   : > { %v1099_v43 = vmax.f32 %v885_v28, 0.0  ;;  %v1100_v14 = vmax.f32 %v974_v53, 0.0  ;;  %1606 = vmatmul.bf16.gmra.mxu0 %v3633_v13 }
 0x1ce   : > { %1695 = vmatmul.bf16.gmra.mxu1 %v3636_v15  ;;  %v1101_v8 = vmax.f32 %v710_v57, 0.0  ;;  %v1102_v53 = vmax.f32 %v799_v29, 0.0 }
 0x1cf   : > { %1784 = vmatmul.bf16.gmra.mxu2 %v3644_v39  ;;  %v3784_v25 = vpack.c.bf16 %v1099_v43, %v1095_v11  ;;  %1873 = vmatmul.bf16.gmra.mxu3 %v3647_v48  ;;  %v3787_v7 = vpack.c.bf16 %v1100_v14, %v1096_v23  ;;  %v3802_v43 = vperm.slane %v3796_v26, 0 }
 0x1d2   : > { %v887_v3 = vpop.f32.mrf.mxu2  ;;  %v976_v31 = vpop.f32.mrf.mxu3 }
 0x1d3   : > { %v711_v60 = vpop.f32.mrf.mxu0  ;;  %v800_v62 = vpop.f32.mrf.mxu1  ;;  %v888_v56 = vadd.f32 %v887_v3, %v3509_v58 }
 0x1d4   : > { %v712_v46 = vadd.f32 %v711_v60, %v3502_v40  ;;  %v801_v51 = vadd.f32 %v800_v62, %v3504_v41  ;;  %v977_v41 = vadd.f32 %v976_v31, %v3511_v59 }
 0x1d5   : > { %v1103_v62 = vmax.f32 %v888_v56, 0.0 }
 0x1d6   : > { %v1105_v28 = vmax.f32 %v712_v46, 0.0  ;;  %v1106_v11 = vmax.f32 %v801_v51, 0.0 }
 0x1d8   : > { %v3798_v45 = vpack.c.bf16 %v1105_v28, %v1101_v8  ;;  %v3804_v40 = vpack.c.bf16 %v1106_v11, %v1102_v53  ;;  %v1104_v8 = vmax.f32 %v977_v41, 0.0  ;;  %v2980_v53 = vld [vmem:[#allocation8 + $0x24] sm:$0xf]  ;;  %v2685_v41 = vld [vmem:[#allocation8 + $0x28] sm:$0xf0] }
 0x1da   : > { %v889_v23 = vpop.f32.mrf.mxu2  ;;  %v978_v57 = vpop.f32.mrf.mxu3 }
 0x1db   : > { %v890_v14 = vadd.f32 %v889_v23, %v3509_v58  ;;  %v1572_v60 = vpop.f32.mrf.mxu0  ;;  %v979_v29 = vadd.f32 %v978_v57, %v3511_v59  ;;  %v1661_v46 = vpop.f32.mrf.mxu1  ;;  %v3012_v58 = vld [vmem:[#allocation8 + $0x124] sm:$0xf]  ;;  %v2813_v59 = vld [vmem:[#allocation8 + $0x128] sm:$0xf0] }
 0x1dc   : > { %v1573_v3 = vadd.f32 %v1572_v60, %v3802_v43  ;;  %v2816_v23 = vor.u32 %v3012_v58, %v2813_v59  ;;  %v2877_v57 = vld [vmem:[#allocation8 + $0x1a8] sm:$0xf0] }
 0x1dd   : > { %v1107_v51 = vmax.f32 %v890_v14, 0.0  ;;  %v1108_v28 = vmax.f32 %v979_v29, 0.0  ;;  %1611 = vmatmul.bf16.gmra.mxu0 %v3653_v32  ;;  %v3028_v14 = vld [vmem:[#allocation8 + $0x1a4] sm:$0xf]  ;;  %v2688_v29 = vor.u32 %v2980_v53, %v2685_v41 }
 0x1de   : > { %1700 = vmatmul.bf16.gmra.mxu1 %v3656_v37  ;;  %v1662_v56 = vadd.f32 %v1661_v46, %v1573_v3  ;;  %v2880_v37 = vor.u32 %v3028_v14, %v2877_v57  ;;  %2102 = vmatpush.bf16.msra.mxu2 %v2816_v23  ;;  %v2996_v46 = vld [vmem:[#allocation8 + $0xa4] sm:$0xf]  ;;  %v2749_v3 = vld [vmem:[#allocation8 + $0xa8] sm:$0xf0] }
 0x1df   : > { %1789 = vmatmul.bf16.gmra.mxu2 %v3664_v63  ;;  %v3814_v31 = vpack.c.bf16 %v1107_v51, %v1103_v62  ;;  %1878 = vmatmul.bf16.gmra.mxu3 %v3667_v5  ;;  %v3817_v11 = vpack.c.bf16 %v1108_v28, %v1104_v8  ;;  %v2752_v8 = vor.u32 %v2996_v46, %v2749_v3 }
 0x1e0   : > { %1924 = vmatpush.bf16.msra.mxu0 %v2688_v29  ;;  %2191 = vmatpush.bf16.msra.mxu3 %v2880_v37 }
 0x1e1   : > { %2013 = vmatpush.bf16.msra.mxu1 %v2752_v8 }
 0x1e2   : > { %v1750_v60 = vpop.f32.mrf.mxu2  ;;  %v1839_v63 = vpop.f32.mrf.mxu3 }
 0x1e3   : > { %v1751_v32 = vadd.f32 %v1750_v60, %v1662_v56  ;;  %v1574_v26 = vpop.f32.mrf.mxu0  ;;  %v1663_v62 = vpop.f32.mrf.mxu1 }
 0x1e4   : > { %v1575_v5 = vadd.f32 %v1574_v26, %v3802_v43 }
 0x1e5   : > { %v1840_v51 = vadd.f32 %v1839_v63, %v1751_v32 }
 0x1e6   : > { %v1664_v28 = vadd.f32 %v1663_v62, %v1575_v5 }
 0x1e7   : > { %2275 = vst [vmem:[%s3820_s23] sm:$0xff] %v1840_v51 }
 0x1ea   : > { %v1752_v58 = vpop.f32.mrf.mxu2  ;;  %v1841_v53 = vpop.f32.mrf.mxu3 }
 0x1eb   : > { %v1753_v59 = vadd.f32 %v1752_v58, %v1664_v28  ;;  %v1577_v56 = vpop.f32.mrf.mxu0  ;;  %v1666_v23 = vpop.f32.mrf.mxu1 }
 0x1ec   : > { %v1578_v32 = vadd.f32 %v1577_v56, %v3802_v43  ;;  %v2805_v56 = vld [vmem:[#allocation8 + $0x118] sm:$0xf0] }
 0x1ed   : > { %v1842_v37 = vadd.f32 %v1841_v53, %v1753_v59  ;;  %1616 = vmatmul.bf16.gmra.mxu0 %v3673_v30  ;;  %v3010_v53 = vld [vmem:[#allocation8 + $0x114] sm:$0xf] }
 0x1ee   : > { %1705 = vmatmul.bf16.gmra.mxu1 %v3676_v42  ;;  %v1667_v63 = vadd.f32 %v1666_v23, %v1578_v32  ;;  %v2978_v23 = vld [vmem:[#allocation8 + $0x14] sm:$0xf]  ;;  %v2808_v32 = vor.u32 %v3010_v53, %v2805_v56 }
 0x1ef   : > { %2277 = vst [vmem:[%s3820_s23 + $0x10] sm:$0xff] %v1842_v37  ;;  %1794 = vmatmul.bf16.gmra.mxu2 %v3684_v9  ;;  %1883 = vmatmul.bf16.gmra.mxu3 %v3687_v21 }
 0x1f0   : > { %2103 = vmatpush.bf16.msra.mxu2 %v2808_v32 }
 0x1f2   : > { %v1755_v5 = vpop.f32.mrf.mxu2  ;;  %v1844_v41 = vpop.f32.mrf.mxu3 }
 0x1f3   : > { %v1756_v26 = vadd.f32 %v1755_v5, %v1667_v63  ;;  %v1579_v14 = vpop.f32.mrf.mxu0  ;;  %v1668_v57 = vpop.f32.mrf.mxu1  ;;  %v2677_v63 = vld [vmem:[#allocation8 + $0x18] sm:$0xf0]  ;;  %v3026_v5 = vld [vmem:[#allocation8 + $0x194] sm:$0xf] }
 0x1f4   : > { %v1580_v29 = vadd.f32 %v1579_v14, %v3802_v43  ;;  %v2680_v14 = vor.u32 %v2978_v23, %v2677_v63 }
 0x1f5   : > { %v1845_v60 = vadd.f32 %v1844_v41, %v1756_v26  ;;  %v2869_v26 = vld [vmem:[#allocation8 + $0x198] sm:$0xf0] }
 0x1f6   : > { %v1669_v62 = vadd.f32 %v1668_v57, %v1580_v29  ;;  %v2872_v57 = vor.u32 %v3026_v5, %v2869_v26  ;;  %1925 = vmatpush.bf16.msra.mxu0 %v2680_v14 }
 0x1f7   : > { %2279 = vst [vmem:[%s3820_s23 + $0x20] sm:$0xff] %v1845_v60 }
 0x1f8   : > { %2192 = vmatpush.bf16.msra.mxu3 %v2872_v57 }
 0x1fa   : > { %v1757_v51 = vpop.f32.mrf.mxu2  ;;  %v1846_v3 = vpop.f32.mrf.mxu3 }
 0x1fb   : > { %v1758_v46 = vadd.f32 %v1757_v51, %v1669_v62  ;;  %v1582_v8 = vpop.f32.mrf.mxu0  ;;  %v1671_v28 = vpop.f32.mrf.mxu1 }
 0x1fc   : > { %v1583_v59 = vadd.f32 %v1582_v8, %v3802_v43  ;;  %v2994_v8 = vld [vmem:[#allocation8 + $0x94] sm:$0xf] }
 0x1fd   : > { %v1847_v58 = vadd.f32 %v1846_v3, %v1758_v46  ;;  %1621 = vmatmul.bf16.gmra.mxu0 %v3693_v24 }
 0x1fe   : > { %1710 = vmatmul.bf16.gmra.mxu1 %v3696_v22  ;;  %v1672_v37 = vadd.f32 %v1671_v28, %v1583_v59  ;;  %v2741_v28 = vld [vmem:[#allocation8 + $0x98] sm:$0xf0] }
 0x1ff   : > { %2281 = vst [vmem:[%s3820_s23 + $0x30] sm:$0xff] %v1847_v58  ;;  %1799 = vmatmul.bf16.gmra.mxu2 %v3704_v34  ;;  %1888 = vmatmul.bf16.gmra.mxu3 %v3707_v38  ;;  %v2744_v58 = vor.u32 %v2994_v8, %v2741_v28 }
 0x201   : > { %2014 = vmatpush.bf16.msra.mxu1 %v2744_v58 }
 0x202   : > { %v1760_v41 = vpop.f32.mrf.mxu2  ;;  %v1849_v29 = vpop.f32.mrf.mxu3 }
 0x203   : > { %v1761_v60 = vadd.f32 %v1760_v41, %v1672_v37  ;;  %v1584_v62 = vpop.f32.mrf.mxu0  ;;  %v1673_v51 = vpop.f32.mrf.mxu1 }
 0x204   : > { %v1585_v3 = vadd.f32 %v1584_v62, %v3802_v43 }
 0x205   : > { %v1850_v46 = vadd.f32 %v1849_v29, %v1761_v60 }
 0x206   : > { %v1674_v59 = vadd.f32 %v1673_v51, %v1585_v3 }
 0x207   : > { %2283 = vst [vmem:[%s3820_s23 + $0x40] sm:$0xff] %v1850_v46 }
 0x20a   : > { %v1762_v53 = vpop.f32.mrf.mxu2  ;;  %v1851_v23 = vpop.f32.mrf.mxu3 }
 0x20b   : > { %v1763_v56 = vadd.f32 %v1762_v53, %v1674_v59  ;;  %v1587_v37 = vpop.f32.mrf.mxu0  ;;  %v1676_v63 = vpop.f32.mrf.mxu1 }
 0x20c   : > { %v1588_v5 = vadd.f32 %v1587_v37, %v3802_v43  ;;  %v2797_v37 = vld [vmem:[#allocation8 + $0x108] sm:$0xf0] }
 0x20d   : > { %v1852_v32 = vadd.f32 %v1851_v23, %v1763_v56  ;;  %1626 = vmatmul.bf16.gmra.mxu0 %v3713_v49  ;;  %v3008_v23 = vld [vmem:[#allocation8 + $0x104] sm:$0xf] }
 0x20e   : > { %1715 = vmatmul.bf16.gmra.mxu1 %v3716_v36  ;;  %v1677_v26 = vadd.f32 %v1676_v63, %v1588_v5  ;;  %v2976_v63 = vld [vmem:[#allocation8 + $0x4] sm:$0xf]  ;;  %v2800_v5 = vor.u32 %v3008_v23, %v2797_v37 }
 0x20f   : > { %2285 = vst [vmem:[%s3820_s23 + $0x50] sm:$0xff] %v1852_v32  ;;  %1804 = vmatmul.bf16.gmra.mxu2 %v3724_v10  ;;  %1893 = vmatmul.bf16.gmra.mxu3 %v3727_v47 }
 0x210   : > { %2104 = vmatpush.bf16.msra.mxu2 %v2800_v5 }
 0x212   : > { %v1765_v41 = vpop.f32.mrf.mxu2  ;;  %v1854_v57 = vpop.f32.mrf.mxu3 }
 0x213   : > { %v1766_v14 = vadd.f32 %v1765_v41, %v1677_v26  ;;  %v1589_v60 = vpop.f32.mrf.mxu0  ;;  %v1678_v29 = vpop.f32.mrf.mxu1  ;;  %v2669_v26 = vld [vmem:[#allocation8 + $0x8] sm:$0xf0]  ;;  %v3024_v41 = vld [vmem:[#allocation8 + $0x184] sm:$0xf] }
 0x214   : > { %v1590_v51 = vadd.f32 %v1589_v60, %v3802_v43  ;;  %v2672_v60 = vor.u32 %v2976_v63, %v2669_v26 }
 0x215   : > { %v1855_v62 = vadd.f32 %v1854_v57, %v1766_v14  ;;  %v2861_v14 = vld [vmem:[#allocation8 + $0x188] sm:$0xf0] }
 0x216   : > { %v1679_v46 = vadd.f32 %v1678_v29, %v1590_v51  ;;  %v2864_v29 = vor.u32 %v3024_v41, %v2861_v14  ;;  %1926 = vmatpush.bf16.msra.mxu0 %v2672_v60 }
 0x217   : > { %2287 = vst [vmem:[%s3820_s23 + $0x60] sm:$0xff] %v1855_v62 }
 0x218   : > { %2193 = vmatpush.bf16.msra.mxu3 %v2864_v29 }
 0x21a   : > { %v1767_v3 = vpop.f32.mrf.mxu2  ;;  %v1856_v28 = vpop.f32.mrf.mxu3 }
 0x21b   : > { %v1768_v8 = vadd.f32 %v1767_v3, %v1679_v46  ;;  %v1592_v58 = vpop.f32.mrf.mxu0  ;;  %v1681_v59 = vpop.f32.mrf.mxu1 }
 0x21c   : > { %v1593_v56 = vadd.f32 %v1592_v58, %v3802_v43  ;;  %v2992_v58 = vld [vmem:[#allocation8 + $0x84] sm:$0xf] }
 0x21d   : > { %v1857_v53 = vadd.f32 %v1856_v28, %v1768_v8  ;;  %1631 = vmatmul.bf16.gmra.mxu0 %v3733_v61 }
 0x21e   : > { %1720 = vmatmul.bf16.gmra.mxu1 %v3736_v12  ;;  %v1682_v32 = vadd.f32 %v1681_v59, %v1593_v56  ;;  %v2733_v59 = vld [vmem:[#allocation8 + $0x88] sm:$0xf0] }
 0x21f   : > { %2289 = vst [vmem:[%s3820_s23 + $0x70] sm:$0xff] %v1857_v53  ;;  %1809 = vmatmul.bf16.gmra.mxu2 %v3744_v52  ;;  %1898 = vmatmul.bf16.gmra.mxu3 %v3747_v0  ;;  %v2736_v53 = vor.u32 %v2992_v58, %v2733_v59 }
 0x221   : > { %2015 = vmatpush.bf16.msra.mxu1 %v2736_v53 }
 0x222   : > { %v1770_v57 = vpop.f32.mrf.mxu2  ;;  %v1859_v51 = vpop.f32.mrf.mxu3 }
 0x223   : > { %v1771_v62 = vadd.f32 %v1770_v57, %v1682_v32  ;;  %v1594_v46 = vpop.f32.mrf.mxu0  ;;  %v1683_v3 = vpop.f32.mrf.mxu1 }
 0x224   : > { %v1595_v28 = vadd.f32 %v1594_v46, %v3802_v43 }
 0x225   : > { %v1860_v8 = vadd.f32 %v1859_v51, %v1771_v62 }
 0x226   : > { %v1684_v56 = vadd.f32 %v1683_v3, %v1595_v28 }
 0x227   : > { %2291 = vst [vmem:[%s3820_s23 + $0x80] sm:$0xff] %v1860_v8 }
 0x22a   : > { %v1772_v23 = vpop.f32.mrf.mxu2  ;;  %v1861_v63 = vpop.f32.mrf.mxu3 }
 0x22b   : > { %v1773_v37 = vadd.f32 %v1772_v23, %v1684_v56  ;;  %v1597_v32 = vpop.f32.mrf.mxu0  ;;  %v1686_v26 = vpop.f32.mrf.mxu1 }
 0x22c   : > { %v1598_v41 = vadd.f32 %v1597_v32, %v3802_v43 }
 0x22d   : > { %v1862_v5 = vadd.f32 %v1861_v63, %v1773_v37  ;;  %1636 = vmatmul.bf16.gmra.mxu0 %v3753_v1 }
 0x22e   : > { %1725 = vmatmul.bf16.gmra.mxu1 %v3756_v55  ;;  %v1687_v14 = vadd.f32 %v1686_v26, %v1598_v41 }
 0x22f   : > { %2293 = vst [vmem:[%s3820_s23 + $0x90] sm:$0xff] %v1862_v5  ;;  %1814 = vmatmul.bf16.gmra.mxu2 %v3764_v27  ;;  %1903 = vmatmul.bf16.gmra.mxu3 %v3767_v44 }
 0x232   : > { %v1775_v57 = vpop.f32.mrf.mxu2  ;;  %v1864_v29 = vpop.f32.mrf.mxu3 }
 0x233   : > { %v1776_v60 = vadd.f32 %v1775_v57, %v1687_v14  ;;  %v1599_v62 = vpop.f32.mrf.mxu0  ;;  %v1688_v51 = vpop.f32.mrf.mxu1 }
 0x234   : > { %v1600_v3 = vadd.f32 %v1599_v62, %v3802_v43 }
 0x235   : > { %v1865_v46 = vadd.f32 %v1864_v29, %v1776_v60 }
 0x236   : > { %v1689_v8 = vadd.f32 %v1688_v51, %v1600_v3 }
 0x237   : > { %2295 = vst [vmem:[%s3820_s23 + $0xa0] sm:$0xff] %v1865_v46 }
 0x23a   : > { %v1777_v28 = vpop.f32.mrf.mxu2  ;;  %v1866_v59 = vpop.f32.mrf.mxu3 }
 0x23b   : > { %v1778_v58 = vadd.f32 %v1777_v28, %v1689_v8  ;;  %v1602_v53 = vpop.f32.mrf.mxu0  ;;  %v1691_v56 = vpop.f32.mrf.mxu1 }
 0x23c   : > { %v1603_v37 = vadd.f32 %v1602_v53, %v3802_v43 }
 0x23d   : > { %v1867_v23 = vadd.f32 %v1866_v59, %v1778_v58  ;;  %1641 = vmatmul.bf16.gmra.mxu0 %v3773_v2 }
 0x23e   : > { %1730 = vmatmul.bf16.gmra.mxu1 %v3776_v17  ;;  %v1692_v63 = vadd.f32 %v1691_v56, %v1603_v37 }
 0x23f   : > { %2297 = vst [vmem:[%s3820_s23 + $0xb0] sm:$0xff] %v1867_v23  ;;  %1819 = vmatmul.bf16.gmra.mxu2 %v3784_v25  ;;  %1908 = vmatmul.bf16.gmra.mxu3 %v3787_v7 }
 0x242   : > { %v1780_v32 = vpop.f32.mrf.mxu2  ;;  %v1869_v5 = vpop.f32.mrf.mxu3 }
 0x243   : > { %v1781_v26 = vadd.f32 %v1780_v32, %v1692_v63  ;;  %v1604_v41 = vpop.f32.mrf.mxu0  ;;  %v1693_v14 = vpop.f32.mrf.mxu1 }
 0x244   : > { %v1605_v60 = vadd.f32 %v1604_v41, %v3802_v43 }
 0x245   : > { %v1870_v57 = vadd.f32 %v1869_v5, %v1781_v26 }
 0x246   : > { %v1694_v29 = vadd.f32 %v1693_v14, %v1605_v60 }
 0x247   : > { %2299 = vst [vmem:[%s3820_s23 + $0xc0] sm:$0xff] %v1870_v57 }
 0x24a   : > { %v1782_v62 = vpop.f32.mrf.mxu2  ;;  %v1871_v46 = vpop.f32.mrf.mxu3 }
 0x24b   : > { %v1783_v51 = vadd.f32 %v1782_v62, %v1694_v29  ;;  %v1607_v3 = vpop.f32.mrf.mxu0  ;;  %v1696_v8 = vpop.f32.mrf.mxu1 }
 0x24c   : > { %v1608_v58 = vadd.f32 %v1607_v3, %v3802_v43 }
 0x24d   : > { %v1872_v28 = vadd.f32 %v1871_v46, %v1783_v51  ;;  %1646 = vmatmul.bf16.gmra.mxu0 %v3798_v45 }
 0x24e   : > { %1735 = vmatmul.bf16.gmra.mxu1 %v3804_v40  ;;  %v1697_v59 = vadd.f32 %v1696_v8, %v1608_v58 }
 0x24f   : > { %2301 = vst [vmem:[%s3820_s23 + $0xd0] sm:$0xff] %v1872_v28  ;;  %1824 = vmatmul.bf16.gmra.mxu2 %v3814_v31  ;;  %1913 = vmatmul.bf16.gmra.mxu3 %v3817_v11 }
 0x252   : > { %v1785_v53 = vpop.f32.mrf.mxu2  ;;  %v1874_v23 = vpop.f32.mrf.mxu3 }
 0x253   : > { %v1786_v56 = vadd.f32 %v1785_v53, %v1697_v59  ;;  %v1609_v37 = vpop.f32.mrf.mxu0  ;;  %v1698_v63 = vpop.f32.mrf.mxu1 }
 0x254   : > { %v1610_v26 = vadd.f32 %v1609_v37, %v3802_v43 }
 0x255   : > { %v1875_v32 = vadd.f32 %v1874_v23, %v1786_v56 }
 0x256   : > { %v1699_v5 = vadd.f32 %v1698_v63, %v1610_v26 }
 0x257   : > { %2303 = vst [vmem:[%s3820_s23 + $0xe0] sm:$0xff] %v1875_v32 }
 0x25a   : > { %v1787_v41 = vpop.f32.mrf.mxu2  ;;  %v1876_v57 = vpop.f32.mrf.mxu3 }
 0x25b   : > { %v1788_v14 = vadd.f32 %v1787_v41, %v1699_v5  ;;  %v1612_v60 = vpop.f32.mrf.mxu0  ;;  %v1701_v29 = vpop.f32.mrf.mxu1 }
 0x25c   : > { %v1613_v51 = vadd.f32 %v1612_v60, %v3802_v43 }
 0x25d   : > { %v1877_v62 = vadd.f32 %v1876_v57, %v1788_v14  ;;  %1927 = vmatmul.bf16.vlgmr.msra.gmra.mxu0 %v3514_v4 }
 0x25e   : > { %2016 = vmatmul.bf16.vlgmr.msra.gmra.mxu1 %v3517_v6  ;;  %v1702_v46 = vadd.f32 %v1701_v29, %v1613_v51 }
 0x25f   : > { %2305 = vst [vmem:[%s3820_s23 + $0xf0] sm:$0xff] %v1877_v62  ;;  %2105 = vmatmul.bf16.vlgmr.msra.gmra.mxu2 %v3523_v19  ;;  %2194 = vmatmul.bf16.vlgmr.msra.gmra.mxu3 %v3525_v20 }
 0x262   : > { %v1790_v3 = vpop.f32.mrf.mxu2  ;;  %v1879_v28 = vpop.f32.mrf.mxu3 }
 0x263   : > { %v1791_v8 = vadd.f32 %v1790_v3, %v1702_v46  ;;  %v1614_v58 = vpop.f32.mrf.mxu0  ;;  %v1703_v59 = vpop.f32.mrf.mxu1 }
 0x264   : > { %v1615_v56 = vadd.f32 %v1614_v58, %v3802_v43  ;;  %v4136_v58 = vld [vmem:[#allocation16_spill] sm:$0xff] }
 0x265   : > { %v1880_v53 = vadd.f32 %v1879_v28, %v1791_v8  ;;  %v4135_v28 = vld [vmem:[#allocation15_spill] sm:$0xff] }
 0x266   : > { %v1704_v23 = vadd.f32 %v1703_v59, %v1615_v56 }
 0x267   : > { %2307 = vst [vmem:[%s3820_s23 + $0x100] sm:$0xff] %v1880_v53 }
 0x26a   : > { %v1792_v4 = vpop.f32.mrf.mxu2  ;;  %v1881_v63 = vpop.f32.mrf.mxu3 }
 0x26b   : > { %v1793_v37 = vadd.f32 %v1792_v4, %v1704_v23  ;;  %v1617_v6 = vpop.f32.mrf.mxu0  ;;  %v1706_v32 = vpop.f32.mrf.mxu1 }
 0x26c   : > { %v1618_v20 = vadd.f32 %v1617_v6, %v3802_v43 }
 0x26d   : > { %v1882_v19 = vadd.f32 %v1881_v63, %v1793_v37  ;;  %1932 = vmatmul.bf16.gmra.mxu0 %v3531_v33 }
 0x26e   : > { %2021 = vmatmul.bf16.gmra.mxu1 %v3534_v35  ;;  %v1707_v26 = vadd.f32 %v1706_v32, %v1618_v20 }
 0x26f   : > { %2309 = vst [vmem:[%s3820_s23 + $0x110] sm:$0xff] %v1882_v19  ;;  %2110 = vmatmul.bf16.gmra.mxu2 %v3540_v50  ;;  %2199 = vmatmul.bf16.gmra.mxu3 %v3542_v54 }
 0x272   : > { %v1795_v5 = vpop.f32.mrf.mxu2  ;;  %v1884_v14 = vpop.f32.mrf.mxu3 }
 0x273   : > { %v1796_v41 = vadd.f32 %v1795_v5, %v1707_v26  ;;  %v1619_v57 = vpop.f32.mrf.mxu0  ;;  %v1708_v60 = vpop.f32.mrf.mxu1 }
 0x274   : > { %v1620_v62 = vadd.f32 %v1619_v57, %v3802_v43  ;;  %v4138_v57 = vld [vmem:[#allocation18_spill] sm:$0xff] }
 0x275   : > { %v1885_v29 = vadd.f32 %v1884_v14, %v1796_v41  ;;  %v4137_v14 = vld [vmem:[#allocation17_spill] sm:$0xff] }
 0x276   : > { %v1709_v51 = vadd.f32 %v1708_v60, %v1620_v62  ;;  %v4139_v60 = vld [vmem:[#allocation19_spill] sm:$0xff] }
 0x277   : > { %2311 = vst [vmem:[%s3820_s23 + $0x120] sm:$0xff] %v1885_v29  ;;  %v4140_v29 = vld [vmem:[#allocation20_spill] sm:$0xff] }
 0x27a   : > { %v1797_v33 = vpop.f32.mrf.mxu2  ;;  %v1886_v3 = vpop.f32.mrf.mxu3 }
 0x27b   : > { %v1798_v46 = vadd.f32 %v1797_v33, %v1709_v51  ;;  %v1622_v35 = vpop.f32.mrf.mxu0  ;;  %v1711_v8 = vpop.f32.mrf.mxu1 }
 0x27c   : > { %v1623_v54 = vadd.f32 %v1622_v35, %v3802_v43 }
 0x27d   : > { %v1887_v50 = vadd.f32 %v1886_v3, %v1798_v46  ;;  %1937 = vmatmul.bf16.gmra.mxu0 %v3548_v16 }
 0x27e   : > { %2026 = vmatmul.bf16.gmra.mxu1 %v3551_v18  ;;  %v1712_v59 = vadd.f32 %v1711_v8, %v1623_v54 }
 0x27f   : > { %2313 = vst [vmem:[%s3820_s23 + $0x130] sm:$0xff] %v1887_v50  ;;  %2115 = vmatmul.bf16.gmra.mxu2 %v4135_v28  ;;  %2204 = vmatmul.bf16.gmra.mxu3 %v4136_v58 }
 0x282   : > { %v1800_v53 = vpop.f32.mrf.mxu2  ;;  %v1889_v23 = vpop.f32.mrf.mxu3 }
 0x283   : > { %v1801_v56 = vadd.f32 %v1800_v53, %v1712_v59  ;;  %v1624_v4 = vpop.f32.mrf.mxu0  ;;  %v1713_v37 = vpop.f32.mrf.mxu1 }
 0x284   : > { %v1625_v6 = vadd.f32 %v1624_v4, %v3802_v43 }
 0x285   : > { %v1890_v63 = vadd.f32 %v1889_v23, %v1801_v56 }
 0x286   : > { %v1714_v32 = vadd.f32 %v1713_v37, %v1625_v6  ;;  %v4141_v37 = vld [vmem:[#allocation21_spill] sm:$0xff]  ;;  %v4143_v6 = vld [vmem:[#allocation23_spill] sm:$0xff] }
 0x287   : > { %2315 = vst [vmem:[%s3820_s23 + $0x140] sm:$0xff] %v1890_v63  ;;  %v4142_v63 = vld [vmem:[#allocation22_spill] sm:$0xff] }
 0x28a   : > { %v1802_v16 = vpop.f32.mrf.mxu2  ;;  %v1891_v20 = vpop.f32.mrf.mxu3 }
 0x28b   : > { %v1803_v19 = vadd.f32 %v1802_v16, %v1714_v32  ;;  %v1627_v18 = vpop.f32.mrf.mxu0  ;;  %v1716_v26 = vpop.f32.mrf.mxu1  ;;  %v4144_v32 = vld [vmem:[#allocation24_spill] sm:$0xff] }
 0x28c   : > { %v1628_v41 = vadd.f32 %v1627_v18, %v3802_v43 }
 0x28d   : > { %v1892_v5 = vadd.f32 %v1891_v20, %v1803_v19  ;;  %1942 = vmatmul.bf16.gmra.mxu0 %v4137_v14 }
 0x28e   : > { %2031 = vmatmul.bf16.gmra.mxu1 %v4138_v57  ;;  %v1717_v62 = vadd.f32 %v1716_v26, %v1628_v41 }
 0x28f   : > { %2317 = vst [vmem:[%s3820_s23 + $0x150] sm:$0xff] %v1892_v5  ;;  %2120 = vmatmul.bf16.gmra.mxu2 %v4139_v60  ;;  %2209 = vmatmul.bf16.gmra.mxu3 %v4140_v29 }
 0x292   : > { %v1805_v51 = vpop.f32.mrf.mxu2  ;;  %v1894_v46 = vpop.f32.mrf.mxu3 }
 0x293   : > { %v1806_v33 = vadd.f32 %v1805_v51, %v1717_v62  ;;  %v1629_v3 = vpop.f32.mrf.mxu0  ;;  %v1718_v35 = vpop.f32.mrf.mxu1 }
 0x294   : > { %v1630_v50 = vadd.f32 %v1629_v3, %v3802_v43 }
 0x295   : > { %v1895_v8 = vadd.f32 %v1894_v46, %v1806_v33 }
 0x296   : > { %v1719_v54 = vadd.f32 %v1718_v35, %v1630_v50  ;;  %v4145_v35 = vld [vmem:[#allocation25_spill] sm:$0xff]  ;;  %v4147_v50 = vld [vmem:[#allocation27_spill] sm:$0xff] }
 0x297   : > { %2319 = vst [vmem:[%s3820_s23 + $0x160] sm:$0xff] %v1895_v8  ;;  %v4146_v8 = vld [vmem:[#allocation26_spill] sm:$0xff] }
 0x29a   : > { %v1807_v28 = vpop.f32.mrf.mxu2  ;;  %v1896_v59 = vpop.f32.mrf.mxu3 }
 0x29b   : > { %v1808_v58 = vadd.f32 %v1807_v28, %v1719_v54  ;;  %v1632_v53 = vpop.f32.mrf.mxu0  ;;  %v1721_v56 = vpop.f32.mrf.mxu1  ;;  %v4148_v54 = vld [vmem:[#allocation28_spill] sm:$0xff] }
 0x29c   : > { %v1633_v4 = vadd.f32 %v1632_v53, %v3802_v43 }
 0x29d   : > { %v1897_v23 = vadd.f32 %v1896_v59, %v1808_v58  ;;  %1947 = vmatmul.bf16.gmra.mxu0 %v4141_v37 }
 0x29e   : > { %2036 = vmatmul.bf16.gmra.mxu1 %v4142_v63  ;;  %v1722_v16 = vadd.f32 %v1721_v56, %v1633_v4 }
 0x29f   : > { %2321 = vst [vmem:[%s3820_s23 + $0x170] sm:$0xff] %v1897_v23  ;;  %2125 = vmatmul.bf16.gmra.mxu2 %v4143_v6  ;;  %2214 = vmatmul.bf16.gmra.mxu3 %v4144_v32 }
 0x2a2   : > { %v1810_v19 = vpop.f32.mrf.mxu2  ;;  %v1899_v18 = vpop.f32.mrf.mxu3 }
 0x2a3   : > { %v1811_v20 = vadd.f32 %v1810_v19, %v1722_v16  ;;  %v1634_v26 = vpop.f32.mrf.mxu0  ;;  %v1723_v5 = vpop.f32.mrf.mxu1 }
 0x2a4   : > { %v1635_v14 = vadd.f32 %v1634_v26, %v3802_v43 }
 0x2a5   : > { %v1900_v41 = vadd.f32 %v1899_v18, %v1811_v20 }
 0x2a6   : > { %v1724_v57 = vadd.f32 %v1723_v5, %v1635_v14  ;;  %v4149_v5 = vld [vmem:[#allocation29_spill] sm:$0xff]  ;;  %v4151_v14 = vld [vmem:[#allocation31_spill] sm:$0xff] }
 0x2a7   : > { %2323 = vst [vmem:[%s3820_s23 + $0x180] sm:$0xff] %v1900_v41  ;;  %v4150_v41 = vld [vmem:[#allocation30_spill] sm:$0xff] }
 0x2aa   : > { %v1812_v60 = vpop.f32.mrf.mxu2  ;;  %v1901_v62 = vpop.f32.mrf.mxu3 }
 0x2ab   : > { %v1813_v29 = vadd.f32 %v1812_v60, %v1724_v57  ;;  %v1637_v51 = vpop.f32.mrf.mxu0  ;;  %v1726_v33 = vpop.f32.mrf.mxu1  ;;  %v4152_v57 = vld [vmem:[#allocation32_spill] sm:$0xff] }
 0x2ac   : > { %v1638_v3 = vadd.f32 %v1637_v51, %v3802_v43 }
 0x2ad   : > { %v1902_v46 = vadd.f32 %v1901_v62, %v1813_v29  ;;  %1952 = vmatmul.bf16.gmra.mxu0 %v4145_v35 }
 0x2ae   : > { %2041 = vmatmul.bf16.gmra.mxu1 %v4146_v8  ;;  %v1727_v28 = vadd.f32 %v1726_v33, %v1638_v3 }
 0x2af   : > { %2325 = vst [vmem:[%s3820_s23 + $0x190] sm:$0xff] %v1902_v46  ;;  %2130 = vmatmul.bf16.gmra.mxu2 %v4147_v50  ;;  %2219 = vmatmul.bf16.gmra.mxu3 %v4148_v54 }
 0x2b2   : > { %v1815_v58 = vpop.f32.mrf.mxu2  ;;  %v1904_v53 = vpop.f32.mrf.mxu3 }
 0x2b3   : > { %v1816_v59 = vadd.f32 %v1815_v58, %v1727_v28  ;;  %v1639_v56 = vpop.f32.mrf.mxu0  ;;  %v1728_v23 = vpop.f32.mrf.mxu1 }
 0x2b4   : > { %v1640_v37 = vadd.f32 %v1639_v56, %v3802_v43 }
 0x2b5   : > { %v1905_v4 = vadd.f32 %v1904_v53, %v1816_v59 }
 0x2b6   : > { %v1729_v63 = vadd.f32 %v1728_v23, %v1640_v37 }
 0x2b7   : > { %2327 = vst [vmem:[%s3820_s23 + $0x1a0] sm:$0xff] %v1905_v4 }
 0x2ba   : > { %v1817_v6 = vpop.f32.mrf.mxu2  ;;  %v1906_v16 = vpop.f32.mrf.mxu3 }
 0x2bb   : > { %v1818_v32 = vadd.f32 %v1817_v6, %v1729_v63  ;;  %v1642_v19 = vpop.f32.mrf.mxu0  ;;  %v1731_v20 = vpop.f32.mrf.mxu1 }
 0x2bc   : > { %v1643_v26 = vadd.f32 %v1642_v19, %v3802_v43 }
 0x2bd   : > { %v1907_v18 = vadd.f32 %v1906_v16, %v1818_v32  ;;  %1957 = vmatmul.bf16.gmra.mxu0 %v4149_v5 }
 0x2be   : > { %2046 = vmatmul.bf16.gmra.mxu1 %v4150_v41  ;;  %v1732_v60 = vadd.f32 %v1731_v20, %v1643_v26 }
 0x2bf   : > { %2329 = vst [vmem:[%s3820_s23 + $0x1b0] sm:$0xff] %v1907_v18  ;;  %2135 = vmatmul.bf16.gmra.mxu2 %v4151_v14  ;;  %2224 = vmatmul.bf16.gmra.mxu3 %v4152_v57  ;;  %v4154_v57 = vld [vmem:[#allocation33_spill] sm:$0xff] }
 0x2c2   : > { %v1820_v29 = vpop.f32.mrf.mxu2  ;;  %v1909_v51 = vpop.f32.mrf.mxu3 }
 0x2c3   : > { %v1821_v62 = vadd.f32 %v1820_v29, %v1732_v60  ;;  %v1644_v33 = vpop.f32.mrf.mxu0  ;;  %v1733_v46 = vpop.f32.mrf.mxu1  ;;  %v4155_v60 = vld [vmem:[#allocation34_spill] sm:$0xff]  ;;  %v4157_v29 = vld [vmem:[#allocation36_spill] sm:$0xff] }
 0x2c4   : > { %v1645_v35 = vadd.f32 %v1644_v33, %v3802_v43 }
 0x2c5   : > { %v1910_v3 = vadd.f32 %v1909_v51, %v1821_v62 }
 0x2c6   : > { %v1734_v8 = vadd.f32 %v1733_v46, %v1645_v35 }
 0x2c7   : > { %2331 = vst [vmem:[%s3820_s23 + $0x1c0] sm:$0xff] %v1910_v3 }
 0x2ca   : > { %v1822_v50 = vpop.f32.mrf.mxu2  ;;  %v1911_v28 = vpop.f32.mrf.mxu3 }
 0x2cb   : > { %v1823_v54 = vadd.f32 %v1822_v50, %v1734_v8  ;;  %v1647_v58 = vpop.f32.mrf.mxu0  ;;  %v1736_v59 = vpop.f32.mrf.mxu1 }
 0x2cc   : > { %v1648_v56 = vadd.f32 %v1647_v58, %v3802_v43 }
 0x2cd   : > { %v1912_v53 = vadd.f32 %v1911_v28, %v1823_v54  ;;  %1962 = vmatmul.bf16.gmra.mxu0 %v3633_v13  ;;  %v4153_v13 = vld [vmem:[#allocation37_spill] sm:$0xff] }
 0x2ce   : > { %2051 = vmatmul.bf16.gmra.mxu1 %v3636_v15  ;;  %v1737_v23 = vadd.f32 %v1736_v59, %v1648_v56  ;;  %v3944_v18 = vperm.slane %v4153_v13, 1 }
 0x2cf   : > { %2333 = vst [vmem:[%s3820_s23 + $0x1d0] sm:$0xff] %v1912_v53  ;;  %2140 = vmatmul.bf16.gmra.mxu2 %v3644_v39  ;;  %2229 = vmatmul.bf16.gmra.mxu3 %v3647_v48 }
 0x2d2   : > { %v1825_v4 = vpop.f32.mrf.mxu2  ;;  %v1914_v63 = vpop.f32.mrf.mxu3 }
 0x2d3   : > { %v1826_v37 = vadd.f32 %v1825_v4, %v1737_v23  ;;  %v1649_v6 = vpop.f32.mrf.mxu0  ;;  %v1738_v32 = vpop.f32.mrf.mxu1 }
 0x2d4   : > { %v1650_v19 = vadd.f32 %v1649_v6, %v3802_v43  ;;  %v4156_v43 = vld [vmem:[#allocation35_spill] sm:$0xff] }
 0x2d5   : > { %v1915_v16 = vadd.f32 %v1914_v63, %v1826_v37 }
 0x2d6   : > { %v1739_v20 = vadd.f32 %v1738_v32, %v1650_v19 }
 0x2d7   : > { %2335 = vst [vmem:[%s3820_s23 + $0x1e0] sm:$0xff] %v1915_v16 }
 0x2da   : > { %v1827_v15 = vpop.f32.mrf.mxu2  ;;  %v1916_v39 = vpop.f32.mrf.mxu3 }
 0x2db   : > { %v1828_v26 = vadd.f32 %v1827_v15, %v1739_v20  ;;  %v1928_v5 = vpop.f32.mrf.mxu0  ;;  %v2017_v48 = vpop.f32.mrf.mxu1 }
 0x2dc   : > { %v1929_v14 = vadd.f32 %v1928_v5, %v3944_v18 }
 0x2dd   : > { %v1917_v41 = vadd.f32 %v1916_v39, %v1828_v26  ;;  %1967 = vmatmul.bf16.gmra.mxu0 %v4154_v57 }
 0x2de   : > { %2056 = vmatmul.bf16.gmra.mxu1 %v4155_v60  ;;  %v2018_v62 = vadd.f32 %v2017_v48, %v1929_v14 }
 0x2df   : > { %2337 = vst [vmem:[%s3820_s23 + $0x1f0] sm:$0xff] %v1917_v41  ;;  %2145 = vmatmul.bf16.gmra.mxu2 %v4156_v43  ;;  %2234 = vmatmul.bf16.gmra.mxu3 %v4157_v29 }
 0x2e2   : > { %v2106_v51 = vpop.f32.mrf.mxu2  ;;  %v2195_v46 = vpop.f32.mrf.mxu3 }
 0x2e3   : > { %v2107_v33 = vadd.f32 %v2106_v51, %v2018_v62  ;;  %v1930_v3 = vpop.f32.mrf.mxu0  ;;  %v2019_v35 = vpop.f32.mrf.mxu1 }
 0x2e4   : > { %v1931_v50 = vadd.f32 %v1930_v3, %v3944_v18 }
 0x2e5   : > { %v2196_v8 = vadd.f32 %v2195_v46, %v2107_v33 }
 0x2e6   : > { %v2020_v54 = vadd.f32 %v2019_v35, %v1931_v50 }
 0x2e7   : > { %2276 = vst [vmem:[%s3820_s23 + $0x8] sm:$0xff] %v2196_v8 }
 0x2ea   : > { %v2108_v28 = vpop.f32.mrf.mxu2  ;;  %v2197_v59 = vpop.f32.mrf.mxu3 }
 0x2eb   : > { %v2109_v58 = vadd.f32 %v2108_v28, %v2020_v54  ;;  %v1933_v53 = vpop.f32.mrf.mxu0  ;;  %v2022_v56 = vpop.f32.mrf.mxu1 }
 0x2ec   : > { %v1934_v4 = vadd.f32 %v1933_v53, %v3944_v18 }
 0x2ed   : > { %v2198_v23 = vadd.f32 %v2197_v59, %v2109_v58  ;;  %1972 = vmatmul.bf16.gmra.mxu0 %v3673_v30 }
 0x2ee   : > { %2061 = vmatmul.bf16.gmra.mxu1 %v3676_v42  ;;  %v2023_v37 = vadd.f32 %v2022_v56, %v1934_v4 }
 0x2ef   : > { %2278 = vst [vmem:[%s3820_s23 + $0x18] sm:$0xff] %v2198_v23  ;;  %2150 = vmatmul.bf16.gmra.mxu2 %v3684_v9  ;;  %2239 = vmatmul.bf16.gmra.mxu3 %v3687_v21 }
 0x2f2   : > { %v2111_v63 = vpop.f32.mrf.mxu2  ;;  %v2200_v32 = vpop.f32.mrf.mxu3 }
 0x2f3   : > { %v2112_v6 = vadd.f32 %v2111_v63, %v2023_v37  ;;  %v1935_v16 = vpop.f32.mrf.mxu0  ;;  %v2024_v19 = vpop.f32.mrf.mxu1 }
 0x2f4   : > { %v1936_v13 = vadd.f32 %v1935_v16, %v3944_v18 }
 0x2f5   : > { %v2201_v20 = vadd.f32 %v2200_v32, %v2112_v6 }
 0x2f6   : > { %v2025_v15 = vadd.f32 %v2024_v19, %v1936_v13 }
 0x2f7   : > { %2280 = vst [vmem:[%s3820_s23 + $0x28] sm:$0xff] %v2201_v20 }
 0x2fa   : > { %v2113_v30 = vpop.f32.mrf.mxu2  ;;  %v2202_v39 = vpop.f32.mrf.mxu3 }
 0x2fb   : > { %v2114_v26 = vadd.f32 %v2113_v30, %v2025_v15  ;;  %v1938_v42 = vpop.f32.mrf.mxu0  ;;  %v2027_v5 = vpop.f32.mrf.mxu1 }
 0x2fc   : > { %v1939_v21 = vadd.f32 %v1938_v42, %v3944_v18 }
 0x2fd   : > { %v2203_v9 = vadd.f32 %v2202_v39, %v2114_v26  ;;  %1977 = vmatmul.bf16.gmra.mxu0 %v3693_v24 }
 0x2fe   : > { %2066 = vmatmul.bf16.gmra.mxu1 %v3696_v22  ;;  %v2028_v48 = vadd.f32 %v2027_v5, %v1939_v21 }
 0x2ff   : > { %2282 = vst [vmem:[%s3820_s23 + $0x38] sm:$0xff] %v2203_v9  ;;  %2155 = vmatmul.bf16.gmra.mxu2 %v3704_v34  ;;  %2244 = vmatmul.bf16.gmra.mxu3 %v3707_v38 }
 0x302   : > { %v2116_v41 = vpop.f32.mrf.mxu2  ;;  %v2205_v57 = vpop.f32.mrf.mxu3 }
 0x303   : > { %v2117_v14 = vadd.f32 %v2116_v41, %v2028_v48  ;;  %v1940_v60 = vpop.f32.mrf.mxu0  ;;  %v2029_v43 = vpop.f32.mrf.mxu1 }
 0x304   : > { %v1941_v62 = vadd.f32 %v1940_v60, %v3944_v18 }
 0x305   : > { %v2206_v29 = vadd.f32 %v2205_v57, %v2117_v14 }
 0x306   : > { %v2030_v51 = vadd.f32 %v2029_v43, %v1941_v62 }
 0x307   : > { %2284 = vst [vmem:[%s3820_s23 + $0x48] sm:$0xff] %v2206_v29 }
 0x30a   : > { %v2118_v24 = vpop.f32.mrf.mxu2  ;;  %v2207_v46 = vpop.f32.mrf.mxu3 }
 0x30b   : > { %v2119_v33 = vadd.f32 %v2118_v24, %v2030_v51  ;;  %v1943_v22 = vpop.f32.mrf.mxu0  ;;  %v2032_v3 = vpop.f32.mrf.mxu1 }
 0x30c   : > { %v1944_v38 = vadd.f32 %v1943_v22, %v3944_v18 }
 0x30d   : > { %v2208_v34 = vadd.f32 %v2207_v46, %v2119_v33  ;;  %1982 = vmatmul.bf16.gmra.mxu0 %v3713_v49 }
 0x30e   : > { %2071 = vmatmul.bf16.gmra.mxu1 %v3716_v36  ;;  %v2033_v35 = vadd.f32 %v2032_v3, %v1944_v38 }
 0x30f   : > { %2286 = vst [vmem:[%s3820_s23 + $0x58] sm:$0xff] %v2208_v34  ;;  %2160 = vmatmul.bf16.gmra.mxu2 %v3724_v10  ;;  %2249 = vmatmul.bf16.gmra.mxu3 %v3727_v47 }
 0x312   : > { %v2121_v8 = vpop.f32.mrf.mxu2  ;;  %v2210_v54 = vpop.f32.mrf.mxu3 }
 0x313   : > { %v2122_v50 = vadd.f32 %v2121_v8, %v2033_v35  ;;  %v1945_v28 = vpop.f32.mrf.mxu0  ;;  %v2034_v58 = vpop.f32.mrf.mxu1 }
 0x314   : > { %v1946_v53 = vadd.f32 %v1945_v28, %v3944_v18 }
 0x315   : > { %v2211_v59 = vadd.f32 %v2210_v54, %v2122_v50 }
 0x316   : > { %v2035_v56 = vadd.f32 %v2034_v58, %v1946_v53 }
 0x317   : > { %2288 = vst [vmem:[%s3820_s23 + $0x68] sm:$0xff] %v2211_v59 }
 0x31a   : > { %v2123_v49 = vpop.f32.mrf.mxu2  ;;  %v2212_v4 = vpop.f32.mrf.mxu3 }
 0x31b   : > { %v2124_v23 = vadd.f32 %v2123_v49, %v2035_v56  ;;  %v1948_v36 = vpop.f32.mrf.mxu0  ;;  %v2037_v37 = vpop.f32.mrf.mxu1 }
 0x31c   : > { %v1949_v47 = vadd.f32 %v1948_v36, %v3944_v18 }
 0x31d   : > { %v2213_v10 = vadd.f32 %v2212_v4, %v2124_v23  ;;  %1987 = vmatmul.bf16.gmra.mxu0 %v3733_v61 }
 0x31e   : > { %2076 = vmatmul.bf16.gmra.mxu1 %v3736_v12  ;;  %v2038_v63 = vadd.f32 %v2037_v37, %v1949_v47 }
 0x31f   : > { %2290 = vst [vmem:[%s3820_s23 + $0x78] sm:$0xff] %v2213_v10  ;;  %2165 = vmatmul.bf16.gmra.mxu2 %v3744_v52  ;;  %2254 = vmatmul.bf16.gmra.mxu3 %v3747_v0 }
 0x322   : > { %v2126_v6 = vpop.f32.mrf.mxu2  ;;  %v2215_v16 = vpop.f32.mrf.mxu3 }
 0x323   : > { %v2127_v32 = vadd.f32 %v2126_v6, %v2038_v63  ;;  %v1950_v19 = vpop.f32.mrf.mxu0  ;;  %v2039_v20 = vpop.f32.mrf.mxu1 }
 0x324   : > { %v1951_v15 = vadd.f32 %v1950_v19, %v3944_v18 }
 0x325   : > { %v2216_v13 = vadd.f32 %v2215_v16, %v2127_v32 }
 0x326   : > { %v2040_v30 = vadd.f32 %v2039_v20, %v1951_v15 }
 0x327   : > { %2292 = vst [vmem:[%s3820_s23 + $0x88] sm:$0xff] %v2216_v13 }
 0x32a   : > { %v2128_v61 = vpop.f32.mrf.mxu2  ;;  %v2217_v39 = vpop.f32.mrf.mxu3 }
 0x32b   : > { %v2129_v26 = vadd.f32 %v2128_v61, %v2040_v30  ;;  %v1953_v12 = vpop.f32.mrf.mxu0  ;;  %v2042_v42 = vpop.f32.mrf.mxu1 }
 0x32c   : > { %v1954_v0 = vadd.f32 %v1953_v12, %v3944_v18 }
 0x32d   : > { %v2218_v52 = vadd.f32 %v2217_v39, %v2129_v26  ;;  %1992 = vmatmul.bf16.gmra.mxu0 %v3753_v1 }
 0x32e   : > { %2081 = vmatmul.bf16.gmra.mxu1 %v3756_v55  ;;  %v2043_v5 = vadd.f32 %v2042_v42, %v1954_v0 }
 0x32f   : > { %2294 = vst [vmem:[%s3820_s23 + $0x98] sm:$0xff] %v2218_v52  ;;  %2170 = vmatmul.bf16.gmra.mxu2 %v3764_v27  ;;  %2259 = vmatmul.bf16.gmra.mxu3 %v3767_v44 }
 0x332   : > { %v2131_v9 = vpop.f32.mrf.mxu2  ;;  %v2220_v48 = vpop.f32.mrf.mxu3 }
 0x333   : > { %v2132_v21 = vadd.f32 %v2131_v9, %v2043_v5  ;;  %v1955_v41 = vpop.f32.mrf.mxu0  ;;  %v2044_v14 = vpop.f32.mrf.mxu1 }
 0x334   : > { %v1956_v60 = vadd.f32 %v1955_v41, %v3944_v18 }
 0x335   : > { %v2221_v57 = vadd.f32 %v2220_v48, %v2132_v21 }
 0x336   : > { %v2045_v43 = vadd.f32 %v2044_v14, %v1956_v60 }
 0x337   : > { %2296 = vst [vmem:[%s3820_s23 + $0xa8] sm:$0xff] %v2221_v57 }
 0x33a   : > { %v2133_v1 = vpop.f32.mrf.mxu2  ;;  %v2222_v62 = vpop.f32.mrf.mxu3 }
 0x33b   : > { %v2134_v29 = vadd.f32 %v2133_v1, %v2045_v43  ;;  %v1958_v55 = vpop.f32.mrf.mxu0  ;;  %v2047_v51 = vpop.f32.mrf.mxu1 }
 0x33c   : > { %v1959_v44 = vadd.f32 %v1958_v55, %v3944_v18 }
 0x33d   : > { %v2223_v27 = vadd.f32 %v2222_v62, %v2134_v29  ;;  %1997 = vmatmul.bf16.gmra.mxu0 %v3773_v2 }
 0x33e   : > { %2086 = vmatmul.bf16.gmra.mxu1 %v3776_v17  ;;  %v2048_v24 = vadd.f32 %v2047_v51, %v1959_v44 }
 0x33f   : > { %2298 = vst [vmem:[%s3820_s23 + $0xb8] sm:$0xff] %v2223_v27  ;;  %2175 = vmatmul.bf16.gmra.mxu2 %v3784_v25  ;;  %2264 = vmatmul.bf16.gmra.mxu3 %v3787_v7 }
 0x342   : > { %v2136_v33 = vpop.f32.mrf.mxu2  ;;  %v2225_v22 = vpop.f32.mrf.mxu3 }
 0x343   : > { %v2137_v46 = vadd.f32 %v2136_v33, %v2048_v24  ;;  %v1960_v3 = vpop.f32.mrf.mxu0  ;;  %v2049_v34 = vpop.f32.mrf.mxu1 }
 0x344   : > { %v1961_v35 = vadd.f32 %v1960_v3, %v3944_v18 }
 0x345   : > { %v2226_v38 = vadd.f32 %v2225_v22, %v2137_v46 }
 0x346   : > { %v2050_v8 = vadd.f32 %v2049_v34, %v1961_v35 }
 0x347   : > { %2300 = vst [vmem:[%s3820_s23 + $0xc8] sm:$0xff] %v2226_v38 }
 0x34a   : > { %v2138_v2 = vpop.f32.mrf.mxu2  ;;  %v2227_v54 = vpop.f32.mrf.mxu3 }
 0x34b   : > { %v2139_v50 = vadd.f32 %v2138_v2, %v2050_v8  ;;  %v1963_v17 = vpop.f32.mrf.mxu0  ;;  %v2052_v28 = vpop.f32.mrf.mxu1 }
 0x34c   : > { %v1964_v7 = vadd.f32 %v1963_v17, %v3944_v18 }
 0x34d   : > { %v2228_v25 = vadd.f32 %v2227_v54, %v2139_v50  ;;  %2002 = vmatmul.bf16.gmra.mxu0 %v3798_v45 }
 0x34e   : > { %2091 = vmatmul.bf16.gmra.mxu1 %v3804_v40  ;;  %v2053_v58 = vadd.f32 %v2052_v28, %v1964_v7 }
 0x34f   : > { %2302 = vst [vmem:[%s3820_s23 + $0xd8] sm:$0xff] %v2228_v25  ;;  %2180 = vmatmul.bf16.gmra.mxu2 %v3814_v31  ;;  %2269 = vmatmul.bf16.gmra.mxu3 %v3817_v11 }
 0x352   : > { %v2141_v59 = vpop.f32.mrf.mxu2  ;;  %v2230_v56 = vpop.f32.mrf.mxu3 }
 0x353   : > { %v2142_v53 = vadd.f32 %v2141_v59, %v2053_v58  ;;  %v1965_v49 = vpop.f32.mrf.mxu0  ;;  %v2054_v23 = vpop.f32.mrf.mxu1 }
 0x354   : > { %v1966_v36 = vadd.f32 %v1965_v49, %v3944_v18 }
 0x355   : > { %v2231_v4 = vadd.f32 %v2230_v56, %v2142_v53 }
 0x356   : > { %v2055_v37 = vadd.f32 %v2054_v23, %v1966_v36 }
 0x357   : > { %2304 = vst [vmem:[%s3820_s23 + $0xe8] sm:$0xff] %v2231_v4 }
 0x35a   : > { %v2143_v45 = vpop.f32.mrf.mxu2  ;;  %v2232_v40 = vpop.f32.mrf.mxu3 }
 0x35b   : > { %v2144_v10 = vadd.f32 %v2143_v45, %v2055_v37  ;;  %v1968_v47 = vpop.f32.mrf.mxu0  ;;  %v2057_v31 = vpop.f32.mrf.mxu1 }
 0x35c   : > { %v1969_v11 = vadd.f32 %v1968_v47, %v3944_v18 }
 0x35d   : > { %v2233_v63 = vadd.f32 %v2232_v40, %v2144_v10 }
 0x35e   : > { %v2058_v6 = vadd.f32 %v2057_v31, %v1969_v11 }
 0x35f   : > { %2306 = vst [vmem:[%s3820_s23 + $0xf8] sm:$0xff] %v2233_v63 }
 0x362   : > { %v2146_v32 = vpop.f32.mrf.mxu2  ;;  %v2235_v19 = vpop.f32.mrf.mxu3 }
 0x363   : > { %v2147_v16 = vadd.f32 %v2146_v32, %v2058_v6  ;;  %v1970_v20 = vpop.f32.mrf.mxu0  ;;  %v2059_v13 = vpop.f32.mrf.mxu1 }
 0x364   : > { %v1971_v30 = vadd.f32 %v1970_v20, %v3944_v18 }
 0x365   : > { %v2236_v15 = vadd.f32 %v2235_v19, %v2147_v16 }
 0x366   : > { %v2060_v61 = vadd.f32 %v2059_v13, %v1971_v30 }
 0x367   : > { %2308 = vst [vmem:[%s3820_s23 + $0x108] sm:$0xff] %v2236_v15 }
 0x36a   : > { %v2148_v26 = vpop.f32.mrf.mxu2  ;;  %v2237_v12 = vpop.f32.mrf.mxu3 }
 0x36b   : > { %v2149_v39 = vadd.f32 %v2148_v26, %v2060_v61  ;;  %v1973_v42 = vpop.f32.mrf.mxu0  ;;  %v2062_v52 = vpop.f32.mrf.mxu1 }
 0x36c   : > { %v1974_v5 = vadd.f32 %v1973_v42, %v3944_v18 }
 0x36d   : > { %v2238_v0 = vadd.f32 %v2237_v12, %v2149_v39 }
 0x36e   : > { %v2063_v9 = vadd.f32 %v2062_v52, %v1974_v5 }
 0x36f   : > { %2310 = vst [vmem:[%s3820_s23 + $0x118] sm:$0xff] %v2238_v0 }
 0x372   : > { %v2151_v21 = vpop.f32.mrf.mxu2  ;;  %v2240_v41 = vpop.f32.mrf.mxu3 }
 0x373   : > { %v2152_v48 = vadd.f32 %v2151_v21, %v2063_v9  ;;  %v1975_v14 = vpop.f32.mrf.mxu0  ;;  %v2064_v57 = vpop.f32.mrf.mxu1 }
 0x374   : > { %v1976_v43 = vadd.f32 %v1975_v14, %v3944_v18 }
 0x375   : > { %v2241_v60 = vadd.f32 %v2240_v41, %v2152_v48 }
 0x376   : > { %v2065_v1 = vadd.f32 %v2064_v57, %v1976_v43 }
 0x377   : > { %2312 = vst [vmem:[%s3820_s23 + $0x128] sm:$0xff] %v2241_v60 }
 0x37a   : > { %v2153_v29 = vpop.f32.mrf.mxu2  ;;  %v2242_v55 = vpop.f32.mrf.mxu3 }
 0x37b   : > { %v2154_v62 = vadd.f32 %v2153_v29, %v2065_v1  ;;  %v1978_v51 = vpop.f32.mrf.mxu0  ;;  %v2067_v27 = vpop.f32.mrf.mxu1 }
 0x37c   : > { %v1979_v24 = vadd.f32 %v1978_v51, %v3944_v18 }
 0x37d   : > { %v2243_v44 = vadd.f32 %v2242_v55, %v2154_v62 }
 0x37e   : > { %v2068_v33 = vadd.f32 %v2067_v27, %v1979_v24 }
 0x37f   : > { %2314 = vst [vmem:[%s3820_s23 + $0x138] sm:$0xff] %v2243_v44 }
 0x382   : > { %v2156_v46 = vpop.f32.mrf.mxu2  ;;  %v2245_v3 = vpop.f32.mrf.mxu3 }
 0x383   : > { %v2157_v22 = vadd.f32 %v2156_v46, %v2068_v33  ;;  %v1980_v34 = vpop.f32.mrf.mxu0  ;;  %v2069_v38 = vpop.f32.mrf.mxu1 }
 0x384   : > { %v1981_v8 = vadd.f32 %v1980_v34, %v3944_v18 }
 0x385   : > { %v2246_v35 = vadd.f32 %v2245_v3, %v2157_v22 }
 0x386   : > { %v2070_v2 = vadd.f32 %v2069_v38, %v1981_v8 }
 0x387   : > { %2316 = vst [vmem:[%s3820_s23 + $0x148] sm:$0xff] %v2246_v35 }
 0x38a   : > { %v2158_v50 = vpop.f32.mrf.mxu2  ;;  %v2247_v17 = vpop.f32.mrf.mxu3 }
 0x38b   : > { %v2159_v54 = vadd.f32 %v2158_v50, %v2070_v2  ;;  %v1983_v28 = vpop.f32.mrf.mxu0  ;;  %v2072_v25 = vpop.f32.mrf.mxu1 }
 0x38c   : > { %v1984_v58 = vadd.f32 %v1983_v28, %v3944_v18 }
 0x38d   : > { %v2248_v7 = vadd.f32 %v2247_v17, %v2159_v54 }
 0x38e   : > { %v2073_v59 = vadd.f32 %v2072_v25, %v1984_v58 }
 0x38f   : > { %2318 = vst [vmem:[%s3820_s23 + $0x158] sm:$0xff] %v2248_v7 }
 0x392   : > { %v2161_v53 = vpop.f32.mrf.mxu2  ;;  %v2250_v49 = vpop.f32.mrf.mxu3 }
 0x393   : > { %v2162_v56 = vadd.f32 %v2161_v53, %v2073_v59  ;;  %v1985_v23 = vpop.f32.mrf.mxu0  ;;  %v2074_v4 = vpop.f32.mrf.mxu1 }
 0x394   : > { %v1986_v37 = vadd.f32 %v1985_v23, %v3944_v18 }
 0x395   : > { %v2251_v36 = vadd.f32 %v2250_v49, %v2162_v56 }
 0x396   : > { %v2075_v45 = vadd.f32 %v2074_v4, %v1986_v37 }
 0x397   : > { %2320 = vst [vmem:[%s3820_s23 + $0x168] sm:$0xff] %v2251_v36 }
 0x39a   : > { %v2163_v10 = vpop.f32.mrf.mxu2  ;;  %v2252_v47 = vpop.f32.mrf.mxu3 }
 0x39b   : > { %v2164_v40 = vadd.f32 %v2163_v10, %v2075_v45  ;;  %v1988_v31 = vpop.f32.mrf.mxu0  ;;  %v2077_v63 = vpop.f32.mrf.mxu1 }
 0x39c   : > { %v1989_v6 = vadd.f32 %v1988_v31, %v3944_v18 }
 0x39d   : > { %v2253_v11 = vadd.f32 %v2252_v47, %v2164_v40 }
 0x39e   : > { %v2078_v32 = vadd.f32 %v2077_v63, %v1989_v6 }
 0x39f   : > { %2322 = vst [vmem:[%s3820_s23 + $0x178] sm:$0xff] %v2253_v11 }
 0x3a2   : > { %v2166_v16 = vpop.f32.mrf.mxu2  ;;  %v2255_v20 = vpop.f32.mrf.mxu3 }
 0x3a3   : > { %v2167_v19 = vadd.f32 %v2166_v16, %v2078_v32  ;;  %v1990_v13 = vpop.f32.mrf.mxu0  ;;  %v2079_v15 = vpop.f32.mrf.mxu1 }
 0x3a4   : > { %v1991_v61 = vadd.f32 %v1990_v13, %v3944_v18 }
 0x3a5   : > { %v2256_v30 = vadd.f32 %v2255_v20, %v2167_v19 }
 0x3a6   : > { %v2080_v26 = vadd.f32 %v2079_v15, %v1991_v61 }
 0x3a7   : > { %2324 = vst [vmem:[%s3820_s23 + $0x188] sm:$0xff] %v2256_v30 }
 0x3aa   : > { %v2168_v39 = vpop.f32.mrf.mxu2  ;;  %v2257_v42 = vpop.f32.mrf.mxu3 }
 0x3ab   : > { %v2169_v12 = vadd.f32 %v2168_v39, %v2080_v26  ;;  %v1993_v52 = vpop.f32.mrf.mxu0  ;;  %v2082_v0 = vpop.f32.mrf.mxu1 }
 0x3ac   : > { %v1994_v9 = vadd.f32 %v1993_v52, %v3944_v18 }
 0x3ad   : > { %v2258_v5 = vadd.f32 %v2257_v42, %v2169_v12 }
 0x3ae   : > { %v2083_v21 = vadd.f32 %v2082_v0, %v1994_v9 }
 0x3af   : > { %2326 = vst [vmem:[%s3820_s23 + $0x198] sm:$0xff] %v2258_v5 }
 0x3b2   : > { %v2171_v48 = vpop.f32.mrf.mxu2  ;;  %v2260_v14 = vpop.f32.mrf.mxu3 }
 0x3b3   : > { %v2172_v41 = vadd.f32 %v2171_v48, %v2083_v21  ;;  %v1995_v57 = vpop.f32.mrf.mxu0  ;;  %v2084_v60 = vpop.f32.mrf.mxu1 }
 0x3b4   : > { %v1996_v1 = vadd.f32 %v1995_v57, %v3944_v18 }
 0x3b5   : > { %v2261_v43 = vadd.f32 %v2260_v14, %v2172_v41 }
 0x3b6   : > { %v2085_v29 = vadd.f32 %v2084_v60, %v1996_v1 }
 0x3b7   : > { %2328 = vst [vmem:[%s3820_s23 + $0x1a8] sm:$0xff] %v2261_v43 }
 0x3ba   : > { %v2173_v62 = vpop.f32.mrf.mxu2  ;;  %v2262_v51 = vpop.f32.mrf.mxu3 }
 0x3bb   : > { %v2174_v55 = vadd.f32 %v2173_v62, %v2085_v29  ;;  %v1998_v27 = vpop.f32.mrf.mxu0  ;;  %v2087_v44 = vpop.f32.mrf.mxu1 }
 0x3bc   : > { %v1999_v33 = vadd.f32 %v1998_v27, %v3944_v18 }
 0x3bd   : > { %v2263_v24 = vadd.f32 %v2262_v51, %v2174_v55 }
 0x3be   : > { %v2088_v46 = vadd.f32 %v2087_v44, %v1999_v33 }
 0x3bf   : > { %2330 = vst [vmem:[%s3820_s23 + $0x1b8] sm:$0xff] %v2263_v24 }
 0x3c2   : > { %v2176_v22 = vpop.f32.mrf.mxu2  ;;  %v2265_v34 = vpop.f32.mrf.mxu3 }
 0x3c3   : > { %v2177_v3 = vadd.f32 %v2176_v22, %v2088_v46  ;;  %v2000_v38 = vpop.f32.mrf.mxu0  ;;  %v2089_v35 = vpop.f32.mrf.mxu1 }
 0x3c4   : > { %v2001_v2 = vadd.f32 %v2000_v38, %v3944_v18 }
 0x3c5   : > { %v2266_v8 = vadd.f32 %v2265_v34, %v2177_v3 }
 0x3c6   : > { %v2090_v50 = vadd.f32 %v2089_v35, %v2001_v2 }
 0x3c7   : > { %2332 = vst [vmem:[%s3820_s23 + $0x1c8] sm:$0xff] %v2266_v8 }
 0x3ca   : > { %v2178_v54 = vpop.f32.mrf.mxu2  ;;  %v2267_v28 = vpop.f32.mrf.mxu3 }
 0x3cb   : > { %v2179_v17 = vadd.f32 %v2178_v54, %v2090_v50  ;;  %v2003_v25 = vpop.f32.mrf.mxu0  ;;  %v2092_v59 = vpop.f32.mrf.mxu1 }
 0x3cc   : > { %v2004_v58 = vadd.f32 %v2003_v25, %v3944_v18 }
 0x3cd   : > { %v2268_v7 = vadd.f32 %v2267_v28, %v2179_v17 }
 0x3ce   : > { %v2093_v53 = vadd.f32 %v2092_v59, %v2004_v58 }
 0x3cf   : > { %2334 = vst [vmem:[%s3820_s23 + $0x1d8] sm:$0xff] %v2268_v7 }
 0x3d2   : > { %v2181_v56 = vpop.f32.mrf.mxu2  ;;  %v2270_v23 = vpop.f32.mrf.mxu3 }
 0x3d3   : > { %v2182_v49 = vadd.f32 %v2181_v56, %v2093_v53  ;;  %v2005_v4 = vpop.f32.mrf.mxu0  ;;  %v2094_v45 = vpop.f32.mrf.mxu1 }
 0x3d4   : > { %v2006_v37 = vadd.f32 %v2005_v4, %v3944_v18 }
 0x3d5   : > { %v2271_v36 = vadd.f32 %v2270_v23, %v2182_v49 }
 0x3d6   : > { %v2095_v10 = vadd.f32 %v2094_v45, %v2006_v37 }
 0x3d7   : > { %2336 = vst [vmem:[%s3820_s23 + $0x1e8] sm:$0xff] %v2271_v36 }
 0x3da   : > { %v2183_v40 = vpop.f32.mrf.mxu2  ;;  %v2272_v31 = vpop.f32.mrf.mxu3 }
 0x3db   : > { %v2184_v47 = vadd.f32 %v2183_v40, %v2095_v10 }
 0x3dd   : > { %v2273_v63 = vadd.f32 %v2272_v31, %v2184_v47 }
 0x3df   : > { %2338 = vst [vmem:[%s3820_s23 + $0x1f8] sm:$0xff] %v2273_v63 }
 0x3e0   : > { %3274 = shalt.err (!%p3271_p10)
}
 0x3e1   : > { %s3332_s17 = smov 256   ;;  %s3333_s16 = smov 16  }
 0x3e2   : > { %3056 = dma.vmem_to_hbm [thread:$0]  (%p3447_p7), %s2354_s13, 8192, %s2356_s14, %s2340_s22, %s3332_s17, %s3332_s17, %s3333_s16  }
 0x3e3 PF: > { %s2370_s23 = sand.u32 1, %s3309_s18   ;;  %p4158_p12 = scmp.ge.s32.totalorder %s3321_s21, 2 }
 0x3e4   : > { %s2371_s26 = scalar_lea.sflag [#allocation4], %s2370_s23 }
 0x3e5   : > { %p3073_p13 = pnand %p4158_p12, %p3399_p6 }
 0x3e7   : > { %p3074_p0 = pneg %p3073_p13 }
 0x3e9   : > { %3304 = dma.done.wait (%p3074_p0), %s2371_s26, 8192  }
 0x3ea   : > { %3306 = vsyncadd (%p3074_p0), %s2371_s26, 4294959104  ;;  %p20_p3 = scmp.ge.s32.totalorder %s3433_s30, 4   ;;  %s4159_s18 = smov %s3313_s19 }
 0x3eb   : > { %s4160_s19 = smov %s3317_s20  ;;  %s4161_s20 = smov %s3443_s9 }
 0x3ec   : > { %s4162_s21 = smov %s3433_s30  ;;  %22 = sbr.rel (!%p20_p3) target bundleno = 7 (0x7), region = 97 }
 0x3f1   :  { %2377 = vsyncpa [#allocation3], 1 }
 0x3f2   :  { %2379 = vsyncpa [#allocation3 + $0x1], 1 }
 0x3f3   :  { %2380 = vsyncpa [#allocation6], 1 }
 0x3f4   :  { %2381 = vsyncpa [#allocation9], 1 }
 0x3f5   :  { %2382 = vsyncpa [#allocation4], 1 }
 0x3f6   :  { %2384 = vsyncpa [#allocation4 + $0x1], 1 }

</bundles_post_ra>
